<compile_context>
chip_gen: v6e
topology: v6e:2x2x1
jax: 0.10.0
libtpu: 0.0.40
codegen_flags: <defaults>
</compile_context>

<pallas_src>
import jax
import jax.numpy as jnp
from jax import lax
from jax.experimental import pallas as pl
from jax.experimental.pallas import tpu as pltpu


# ----------------------------------------------------------------------------
# Fused kernel: (block-diag batched) LSTM path encoders + control gate + masked
# max over time + matching MLP.  grid=(1,), everything VMEM resident, timestep
# loop fully unrolled in-kernel with pl.when(t < max_len) dead-step skipping.
# ----------------------------------------------------------------------------
def _fused_match_kernel(maxlen_ref,                       # SMEM (1,) int32 prefetch
                        xblk_ref,                         # (T, 2B, 2D) block-diag x
                        mask_ref,                         # (T, 2B, H)  {0,1} pad mask
                        rq_ref,                           # (B, 3D) = [hu, hv, qf]
                        h0_ref,                           # (2B, 2H) block-diag h0
                        c0_ref,                           # (2B, H)  c0
                        wx_ref,                           # (2D, 4H) vstack(Wih_p,Wih_c)
                        wh_ref,                           # (2H, 4H) vstack(Whh_p,Whh_c)
                        b_ref,                            # (2B, 4H) per-row bias
                        wc_ref,                           # (2D, H)  vstack(Wc_p, Wc_c)
                        w1rq_ref,                         # (3D, HmP)
                        w1pu_ref,                         # (H, HmP)
                        w1pv_ref,                         # (H, HmP)
                        b1_ref,                           # (1, HmP)
                        w2_ref,                           # (HmP, 1)
                        b2_ref,                           # (1, 1)
                        out_ref,                          # (B, 1)
                        h_sc, c_sc, acc_sc):              # VMEM scratch
    T = xblk_ref.shape[0]
    BB, H = c_sc.shape                                    # BB = 2B
    B = out_ref.shape[0]

    max_len = maxlen_ref[0]

    # Loop-invariant weight loads (the timestep loop below is fully unrolled).
    wx = wx_ref[...]
    wh = wh_ref[...]
    bias = b_ref[...]

    # Gate-activation lane constants (built once, hoisted): sigmoid on i/f/o lanes,
    # tanh on g lanes via tanh(x) = 2*sigmoid(2x) - 1 -> one full-vreg EUP op/step.
    lane = lax.broadcasted_iota(jnp.int32, (BB, 4 * H), 1)
    is_g = jnp.logical_and(lane >= 2 * H, lane < 3 * H)
    scale = jnp.where(is_g, 2.0, 1.0)
    shift = jnp.where(is_g, -1.0, 0.0)

    # Block-diagonal placement mask for the hidden state: rows < B live in columns
    # [0:H], rows >= B in columns [H:2H], so one vstacked W_hh serves both LSTMs.
    row = lax.broadcasted_iota(jnp.int32, (BB, 2 * H), 0)
    col = lax.broadcasted_iota(jnp.int32, (BB, 2 * H), 1)
    blk = jnp.where((row < B) == (col < H), 1.0, 0.0)

    # Control gate c = ReLU(p[:, 0, :] @ Wc), both paths at once (block-diag input).
    ctrl = jnp.maximum(
        jnp.dot(xblk_ref[0], wc_ref[...], preferred_element_type=jnp.float32), 0.0)

    h_sc[...] = h0_ref[...]
    c_sc[...] = c0_ref[...]
    acc_sc[...] = jnp.full(acc_sc.shape, -jnp.inf, acc_sc.dtype)   # NOTE: lens >= 1

    for t in range(T):          # fully unrolled; dead timesteps skipped at runtime
        @pl.when(t < max_len)
        def _():
            x_t = xblk_ref[t]                                        # (2B, 2D)
            gates = (jnp.dot(x_t, wx, preferred_element_type=jnp.float32)
                     + jnp.dot(h_sc[...], wh, preferred_element_type=jnp.float32)
                     + bias)                                         # (2B, 4H)
            act = jax.nn.sigmoid(gates * scale) * scale + shift      # i,f,o=sig; g=tanh
            i = act[:, 0:H]
            f = act[:, H:2 * H]
            g = act[:, 2 * H:3 * H]
            o = act[:, 3 * H:4 * H]
            c_new = f * c_sc[...] + i * g
            h_new = o * jnp.tanh(c_new)                              # (2B, H)
            c_sc[...] = c_new
            # back to block-diagonal layout for the next step's stacked matmul
            h_sc[...] = jnp.concatenate([h_new, h_new], axis=-1) * blk
            # pack_padded semantics: t < len -> ctrl*h ; len <= t < max_len -> 0
            acc_sc[...] = jnp.maximum(acc_sc[...], mask_ref[t] * (ctrl * h_new))

    # ---- matching MLP epilogue (hidden padded to 128 lanes; exact) ----
    acc = acc_sc[...]                                                # (2B, H)
    hpu = acc[0:B, :]
    hpv = acc[B:2 * B, :]
    hid = (jnp.dot(rq_ref[...], w1rq_ref[...], preferred_element_type=jnp.float32)
           + jnp.dot(hpu, w1pu_ref[...], preferred_element_type=jnp.float32)
           + jnp.dot(hpv, w1pv_ref[...], preferred_element_type=jnp.float32)
           + b1_ref[...])
    hid = jnp.where(hid > 0, hid, 0.01 * hid)                        # LeakyReLU(0.01)
    out_ref[...] = (jnp.dot(hid, w2_ref[...], preferred_element_type=jnp.float32)
                    + b2_ref[...])


def fused_match_forward(max_len, x_blk, mask, rq, h0_blk, c0_all,
                        wx, wh, b_all, wc,
                        w1rq, w1pu, w1pv, b1, w2, b2):
    B = rq.shape[0]
    tensors = (x_blk, mask, rq, h0_blk, c0_all, wx, wh, b_all, wc,
               w1rq, w1pu, w1pv, b1, w2, b2)

    def _full(a):
        if a.ndim == 3:
            return pl.BlockSpec(a.shape, lambda i, ml: (0, 0, 0))
        return pl.BlockSpec(a.shape, lambda i, ml: (0, 0))

    BB = c0_all.shape[0]
    H = c0_all.shape[-1]
    grid_spec = pltpu.PrefetchScalarGridSpec(
        num_scalar_prefetch=1,                       # max_len lives in SMEM
        grid=(1,),
        in_specs=[_full(a) for a in tensors],
        out_specs=pl.BlockSpec((B, 1), lambda i, ml: (0, 0)),
        scratch_shapes=[
            pltpu.VMEM((BB, 2 * H), jnp.float32),    # hidden state (block-diag)
            pltpu.VMEM((BB, H), jnp.float32),        # cell state
            pltpu.VMEM((BB, H), jnp.float32),        # running max of ctrl*h
        ],
    )
    return pl.pallas_call(
        _fused_match_kernel,
        out_shape=jax.ShapeDtypeStruct((B, 1), jnp.float32),
        grid_spec=grid_spec,
        compiler_params=pltpu.CompilerParams(dimension_semantics=("arbitrary",)),
    )(max_len, *tensors)


# ----------------------------------------------------------------------------
# MatchModel wrapper (mode='rp'): parameters initialized deterministically.
# ----------------------------------------------------------------------------
class MatchModelPallas:
    def __init__(self, key, vocab_size=50, in_dim=32, out_dim=32,
                 match_hidden=100, match_hidden_pad=128, batch_size=2):
        assert match_hidden_pad >= match_hidden
        D, H = in_dim, out_dim
        self.in_dim, self.out_dim = D, H
        self.batch_size = batch_size
        self.l_dim = D + H          # 'r' + 'p' branches
        self.r_dim = D
        Hm, HmP = match_hidden, match_hidden_pad
        ks = jax.random.split(key, 20)
        n = lambda k, s: (0.1 * jax.random.normal(k, s)).astype(jnp.float32)

        self.embedding = n(ks[0], (vocab_size, D))

        # raw per-path parameters (stored pre-transposed for right-multiplication)
        self.p_w_ih = n(ks[1], (D, 4 * H))
        self.p_w_hh = n(ks[2], (H, 4 * H))
        self.p_b = n(ks[3], (1, 4 * H))            # b_ih + b_hh combined
        self.c_w_ih = n(ks[4], (D, 4 * H))
        self.c_w_hh = n(ks[5], (H, 4 * H))
        self.c_b = n(ks[6], (1, 4 * H))
        self.p_wc = n(ks[7], (D, H))               # control Linear (bias-free)
        self.c_wc = n(ks[8], (D, H))
        # init_hidden uses torch.randn at call time; made deterministic here.
        self.p_h0 = n(ks[9], (batch_size, H))
        self.p_c0 = n(ks[10], (batch_size, H))
        self.c_h0 = n(ks[11], (batch_size, H))
        self.c_c0 = n(ks[12], (batch_size, H))
        # match MLP: Linear(2*l_dim + r_dim -> Hm) -> LeakyReLU -> Linear(Hm -> 1)
        self.w1u = n(ks[13], (self.l_dim, Hm))
        self.w1v = n(ks[14], (self.l_dim, Hm))
        self.w1q = n(ks[15], (self.r_dim, Hm))
        self.b1 = n(ks[16], (1, Hm))
        self.w2 = n(ks[17], (Hm, 1))
        self.b2 = n(ks[18], (1, 1))

        # ---- stacked / padded kernel-side parameters (built once at init) ----
        B = batch_size
        self.k_wx = jnp.concatenate([self.p_w_ih, self.c_w_ih], axis=0)   # (2D,4H)
        self.k_wh = jnp.concatenate([self.p_w_hh, self.c_w_hh], axis=0)   # (2H,4H)
        self.k_wc = jnp.concatenate([self.p_wc, self.c_wc], axis=0)       # (2D,H)
        self.k_b = jnp.concatenate(
            [jnp.broadcast_to(self.p_b, (B, 4 * H)),
             jnp.broadcast_to(self.c_b, (B, 4 * H))], axis=0)             # (2B,4H)
        zH = jnp.zeros((B, H), jnp.float32)
        self.k_h0 = jnp.concatenate(
            [jnp.concatenate([self.p_h0, zH], axis=-1),
             jnp.concatenate([zH, self.c_h0], axis=-1)], axis=0)          # (2B,2H)
        self.k_c0 = jnp.concatenate([self.p_c0, self.c_c0], axis=0)       # (2B,H)
        pad = HmP - Hm
        padc = lambda w: jnp.pad(w, ((0, 0), (0, pad)))
        self.k_w1rq = padc(jnp.concatenate(
            [self.w1u[:D], self.w1v[:D], self.w1q], axis=0))              # (3D,HmP)
        self.k_w1pu = padc(self.w1u[D:])                                  # (H,HmP)
        self.k_w1pv = padc(self.w1v[D:])                                  # (H,HmP)
        self.k_b1 = padc(self.b1)                                         # (1,HmP)
        self.k_w2 = jnp.pad(self.w2, ((0, pad), (0, 0)))                  # (HmP,1)

    def forward(self, q, u, v, pu, pv, lens):
        B = q.shape[0]
        assert B == self.batch_size, "init_hidden state was built for a fixed batch"
        emb = self.embedding
        D, H = self.in_dim, self.out_dim
        qf, hu, hv = emb[q], emb[u], emb[v]

        # time-major embedded paths, batch-stacked with block-diagonal features
        xu = jnp.transpose(emb[pu], (1, 0, 2))             # (T, B, D)
        xv = jnp.transpose(emb[pv], (1, 0, 2))
        T = xu.shape[0]
        zD = jnp.zeros_like(xu)
        x_blk = jnp.concatenate(
            [jnp.concatenate([xu, zD], axis=-1),
             jnp.concatenate([zD, xv], axis=-1)], axis=1)  # (T, 2B, 2D)

        lens32 = lens.astype(jnp.int32)                    # lens >= 1 required
        lens_all = jnp.concatenate([lens32[:, 0], lens32[:, 1]], axis=0)   # (2B,)
        step_mask = (jnp.arange(T, dtype=jnp.int32)[:, None]
                     < lens_all[None, :]).astype(jnp.float32)              # (T,2B)
        mask = jnp.broadcast_to(step_mask[:, :, None], (T, 2 * B, H))
        max_len = jnp.max(lens_all).reshape(1)             # (1,) int32 -> SMEM

        rq = jnp.concatenate([hu, hv, qf], axis=-1)        # (B, 3D)

        return fused_match_forward(
            max_len, x_blk, mask, rq, self.k_h0, self.k_c0,
            self.k_wx, self.k_wh, self.k_b, self.k_wc,
            self.k_w1rq, self.k_w1pu, self.k_w1pv, self.k_b1, self.k_w2, self.b2)

    # Pure-JAX reference (unstacked, unpadded params) for checking the kernel.
    def forward_ref(self, q, u, v, pu, pv, lens):
        emb = self.embedding
        qf, hu, hv = emb[q], emb[u], emb[v]

        def path(p, ln, h0, c0, w_ih, w_hh, b, wc):
            x = emb[p]                                     # (B, T, D)
            B, T, D = x.shape
            H = h0.shape[-1]
            ctrl = jnp.maximum(x[:, 0, :] @ wc, 0.0)
            max_len = jnp.max(ln)

            def step(carry, xt_t):
                h, c = carry
                xt, t = xt_t
                gates = xt @ w_ih + h @ w_hh + b
                i = jax.nn.sigmoid(gates[:, 0:H])
                f = jax.nn.sigmoid(gates[:, H:2 * H])
                g = jnp.tanh(gates[:, 2 * H:3 * H])
                o = jax.nn.sigmoid(gates[:, 3 * H:4 * H])
                c = f * c + i * g
                h = o * jnp.tanh(c)
                pad = jnp.where(t < max_len, 0.0, -jnp.inf)
                val = jnp.where(t < ln[:, None], ctrl * h, pad)
                return (h, c), val

            _, vals = jax.lax.scan(step, (h0, c0),
                                   (jnp.transpose(x, (1, 0, 2)), jnp.arange(T)))
            return jnp.max(vals, axis=0)

        hpu = path(pu, lens[:, 0], self.p_h0, self.p_c0,
                   self.p_w_ih, self.p_w_hh, self.p_b, self.p_wc)
        hpv = path(pv, lens[:, 1], self.c_h0, self.c_c0,
                   self.c_w_ih, self.c_w_hh, self.c_b, self.c_wc)
        ur = jnp.concatenate([hu, hpu], -1)
        vr = jnp.concatenate([hv, hpv], -1)
        h = ur @ self.w1u + vr @ self.w1v + qf @ self.w1q + self.b1
        h = jnp.where(h > 0, h, 0.01 * h)
        return h @ self.w2 + self.b2


if __name__ == "__main__":
    key = jax.random.PRNGKey(0)
    k_model, k_q, k_u, k_v, k_pu, k_pv = jax.random.split(key, 6)

    B, T, vocab, in_dim, out_dim = 2, 8, 50, 32, 32
    model = MatchModelPallas(k_model, vocab_size=vocab, in_dim=in_dim,
                             out_dim=out_dim, match_hidden=100, batch_size=B)

    q = jax.random.randint(k_q, (B,), 0, vocab)
    u = jax.random.randint(k_u, (B,), 0, vocab)
    v = jax.random.randint(k_v, (B,), 0, vocab)
    pu = jax.random.randint(k_pu, (B, T), 0, vocab)
    pv = jax.random.randint(k_pv, (B, T), 0, vocab)
    lens = jnp.array([[8, 5], [6, 8]], dtype=jnp.int32)   # [B, 2]; lens >= 1

    scores = model.forward(q, u, v, pu, pv, lens)
    jax.block_until_ready(scores)

    ref = model.forward_ref(q, u, v, pu, pv, lens)
    assert scores.shape == (B, 1), scores.shape
    assert jnp.allclose(scores, ref, atol=2e-3, rtol=2e-3), (scores, ref)

    print("KERNEL_OK")
</pallas_src>

<mosaic_0001>
module attributes {stable_mosaic.version = 11 : i64} {
  func.func @_fused_match_kernel(%arg0: i32, %arg1: memref<1xi32, #tpu.memory_space<smem>>, %arg2: memref<8x4x64xf32, #tpu.memory_space<vmem>>, %arg3: memref<8x4x32xf32, #tpu.memory_space<vmem>>, %arg4: memref<2x96xf32, #tpu.memory_space<vmem>>, %arg5: memref<4x64xf32, #tpu.memory_space<vmem>>, %arg6: memref<4x32xf32, #tpu.memory_space<vmem>>, %arg7: memref<64x128xf32, #tpu.memory_space<vmem>>, %arg8: memref<64x128xf32, #tpu.memory_space<vmem>>, %arg9: memref<4x128xf32, #tpu.memory_space<vmem>>, %arg10: memref<64x32xf32, #tpu.memory_space<vmem>>, %arg11: memref<96x128xf32, #tpu.memory_space<vmem>>, %arg12: memref<32x128xf32, #tpu.memory_space<vmem>>, %arg13: memref<32x128xf32, #tpu.memory_space<vmem>>, %arg14: memref<1x128xf32, #tpu.memory_space<vmem>>, %arg15: memref<128x1xf32, #tpu.memory_space<vmem>>, %arg16: memref<1x1xf32, #tpu.memory_space<vmem>>, %arg17: memref<2x1xf32, #tpu.memory_space<vmem>>, %arg18: memref<4x64xf32, #tpu.memory_space<vmem>>, %arg19: memref<4x32xf32, #tpu.memory_space<vmem>>, %arg20: memref<4x32xf32, #tpu.memory_space<vmem>>) attributes {dimension_semantics = [#tpu.dimension_semantics<arbitrary>], iteration_bounds = array<i64: 1>, scalar_prefetch = 1 : i64, scratch_operands = 3 : i64, tpu.core_type = #tpu.core_type<tc>, window_params = [{pipeline_mode = #tpu.pipeline_mode<synchronous>, transform_indices = @transform_0, window_bounds = array<i64: 8, 4, 64>}, {pipeline_mode = #tpu.pipeline_mode<synchronous>, transform_indices = @transform_1, window_bounds = array<i64: 8, 4, 32>}, {pipeline_mode = #tpu.pipeline_mode<synchronous>, transform_indices = @transform_2, window_bounds = array<i64: 2, 96>}, {pipeline_mode = #tpu.pipeline_mode<synchronous>, transform_indices = @transform_3, window_bounds = array<i64: 4, 64>}, {pipeline_mode = #tpu.pipeline_mode<synchronous>, transform_indices = @transform_4, window_bounds = array<i64: 4, 32>}, {pipeline_mode = #tpu.pipeline_mode<synchronous>, transform_indices = @transform_5, window_bounds = array<i64: 64, 128>}, {pipeline_mode = #tpu.pipeline_mode<synchronous>, transform_indices = @transform_6, window_bounds = array<i64: 64, 128>}, {pipeline_mode = #tpu.pipeline_mode<synchronous>, transform_indices = @transform_7, window_bounds = array<i64: 4, 128>}, {pipeline_mode = #tpu.pipeline_mode<synchronous>, transform_indices = @transform_8, window_bounds = array<i64: 64, 32>}, {pipeline_mode = #tpu.pipeline_mode<synchronous>, transform_indices = @transform_9, window_bounds = array<i64: 96, 128>}, {pipeline_mode = #tpu.pipeline_mode<synchronous>, transform_indices = @transform_10, window_bounds = array<i64: 32, 128>}, {pipeline_mode = #tpu.pipeline_mode<synchronous>, transform_indices = @transform_11, window_bounds = array<i64: 32, 128>}, {pipeline_mode = #tpu.pipeline_mode<synchronous>, transform_indices = @transform_12, window_bounds = array<i64: 1, 128>}, {pipeline_mode = #tpu.pipeline_mode<synchronous>, transform_indices = @transform_13, window_bounds = array<i64: 128, 1>}, {pipeline_mode = #tpu.pipeline_mode<synchronous>, transform_indices = @transform_14, window_bounds = array<i64: 1, 1>}, {pipeline_mode = #tpu.pipeline_mode<synchronous>, transform_indices = @transform_15, window_bounds = array<i64: 2, 1>}]} {
    %c0 = arith.constant 0 : index
    %0 = memref.load %arg1[%c0] : memref<1xi32, #tpu.memory_space<smem>>
    %c0_0 = arith.constant 0 : index
    %c0_1 = arith.constant 0 : index
    %1 = vector.load %arg7[%c0_0, %c0_1] : memref<64x128xf32, #tpu.memory_space<vmem>>, vector<64x128xf32>
    %c0_2 = arith.constant 0 : index
    %c0_3 = arith.constant 0 : index
    %2 = vector.load %arg8[%c0_2, %c0_3] : memref<64x128xf32, #tpu.memory_space<vmem>>, vector<64x128xf32>
    %c0_4 = arith.constant 0 : index
    %c0_5 = arith.constant 0 : index
    %3 = vector.load %arg9[%c0_4, %c0_5] : memref<4x128xf32, #tpu.memory_space<vmem>>, vector<4x128xf32>
    %4 = tpu.iota {dimensions = array<i32: 1>} : vector<4x128xi32>
    %c64_i32 = arith.constant 64 : i32
    %5 = vector.broadcast %c64_i32 : i32 to vector<4x128xi32>
    %6 = arith.cmpi sge, %4, %5 : vector<4x128xi32>
    %c96_i32 = arith.constant 96 : i32
    %7 = vector.broadcast %c96_i32 : i32 to vector<4x128xi32>
    %8 = arith.cmpi slt, %4, %7 : vector<4x128xi32>
    %9 = arith.andi %6, %8 : vector<4x128xi1>
    %cst = arith.constant 2.000000e+00 : f32
    %cst_6 = arith.constant 1.000000e+00 : f32
    %10 = vector.broadcast %cst : f32 to vector<4x128xf32>
    %11 = vector.broadcast %cst_6 : f32 to vector<4x128xf32>
    %12 = arith.select %9, %10, %11 : vector<4x128xi1>, vector<4x128xf32>
    %cst_7 = arith.constant -1.000000e+00 : f32
    %cst_8 = arith.constant 0.000000e+00 : f32
    %13 = vector.broadcast %cst_7 : f32 to vector<4x128xf32>
    %14 = vector.broadcast %cst_8 : f32 to vector<4x128xf32>
    %15 = arith.select %9, %13, %14 : vector<4x128xi1>, vector<4x128xf32>
    %16 = tpu.iota {dimensions = array<i32: 0>} : vector<4x64xi32>
    %17 = tpu.iota {dimensions = array<i32: 1>} : vector<4x64xi32>
    %c2_i32 = arith.constant 2 : i32
    %18 = vector.broadcast %c2_i32 : i32 to vector<4x64xi32>
    %19 = arith.cmpi slt, %16, %18 : vector<4x64xi32>
    %c32_i32 = arith.constant 32 : i32
    %20 = vector.broadcast %c32_i32 : i32 to vector<4x64xi32>
    %21 = arith.cmpi slt, %17, %20 : vector<4x64xi32>
    %22 = arith.xori %19, %21 : vector<4x64xi1>
    %cst_9 = arith.constant dense<true> : vector<4x64xi1>
    %23 = arith.xori %22, %cst_9 : vector<4x64xi1>
    %cst_10 = arith.constant 1.000000e+00 : f32
    %cst_11 = arith.constant 0.000000e+00 : f32
    %24 = vector.broadcast %cst_10 : f32 to vector<4x64xf32>
    %25 = vector.broadcast %cst_11 : f32 to vector<4x64xf32>
    %26 = arith.select %23, %24, %25 : vector<4x64xi1>, vector<4x64xf32>
    %c0_12 = arith.constant 0 : index
    %c0_13 = arith.constant 0 : index
    %c0_14 = arith.constant 0 : index
    %27 = vector.load %arg2[%c0_12, %c0_13, %c0_14] : memref<8x4x64xf32, #tpu.memory_space<vmem>>, vector<1x4x64xf32>
    %28 = vector.shape_cast %27 : vector<1x4x64xf32> to vector<4x64xf32>
    %c0_15 = arith.constant 0 : index
    %c0_16 = arith.constant 0 : index
    %29 = vector.load %arg10[%c0_15, %c0_16] : memref<64x32xf32, #tpu.memory_space<vmem>>, vector<64x32xf32>
    %cst_17 = arith.constant dense<0.000000e+00> : vector<4x32xf32>
    %30 = tpu.matmul %28, %29, %cst_17 {dimension_numbers = #tpu.dot_dimension_numbers<[1], [0], [0], [1], [0, 0, 1, 1], [], []>} : vector<4x64xf32>, vector<64x32xf32>, vector<4x32xf32> -> vector<4x32xf32>
    %cst_18 = arith.constant 0.000000e+00 : f32
    %31 = vector.broadcast %cst_18 : f32 to vector<4x32xf32>
    %32 = arith.maximumf %30, %31 : vector<4x32xf32>
    %c0_19 = arith.constant 0 : index
    %c0_20 = arith.constant 0 : index
    %33 = vector.load %arg5[%c0_19, %c0_20] : memref<4x64xf32, #tpu.memory_space<vmem>>, vector<4x64xf32>
    %c0_21 = arith.constant 0 : index
    %c0_22 = arith.constant 0 : index
    %34 = vector.load %arg18[%c0_21, %c0_22] : memref<4x64xf32, #tpu.memory_space<vmem>>, vector<4x64xf32>
    tpu.vector_store %arg18[%c0_21, %c0_22], %33 {strides = array<i32>} : memref<4x64xf32, #tpu.memory_space<vmem>>, vector<4x64xf32>,
    %c0_23 = arith.constant 0 : index
    %c0_24 = arith.constant 0 : index
    %35 = vector.load %arg6[%c0_23, %c0_24] : memref<4x32xf32, #tpu.memory_space<vmem>>, vector<4x32xf32>
    %c0_25 = arith.constant 0 : index
    %c0_26 = arith.constant 0 : index
    %36 = vector.load %arg19[%c0_25, %c0_26] : memref<4x32xf32, #tpu.memory_space<vmem>>, vector<4x32xf32>
    tpu.vector_store %arg19[%c0_25, %c0_26], %35 {strides = array<i32>} : memref<4x32xf32, #tpu.memory_space<vmem>>, vector<4x32xf32>,
    %cst_27 = arith.constant 0xFF800000 : f32
    %37 = vector.broadcast %cst_27 : f32 to vector<4x32xf32>
    %c0_28 = arith.constant 0 : index
    %c0_29 = arith.constant 0 : index
    %38 = vector.load %arg20[%c0_28, %c0_29] : memref<4x32xf32, #tpu.memory_space<vmem>>, vector<4x32xf32>
    tpu.vector_store %arg20[%c0_28, %c0_29], %37 {strides = array<i32>} : memref<4x32xf32, #tpu.memory_space<vmem>>, vector<4x32xf32>,
    %c0_i32 = arith.constant 0 : i32
    %39 = arith.cmpi sgt, %0, %c0_i32 : i32
    %40 = arith.extui %39 : i1 to i32
    %c0_i32_30 = arith.constant 0 : i32
    %41 = arith.cmpi ne, %40, %c0_i32_30 : i32
    scf.if %41 {
      %c0_63 = arith.constant 0 : index
      %c0_64 = arith.constant 0 : index
      %c0_65 = arith.constant 0 : index
      %89 = vector.load %arg2[%c0_63, %c0_64, %c0_65] : memref<8x4x64xf32, #tpu.memory_space<vmem>>, vector<1x4x64xf32>
      %90 = vector.shape_cast %89 : vector<1x4x64xf32> to vector<4x64xf32>
      %cst_66 = arith.constant dense<0.000000e+00> : vector<4x128xf32>
      %91 = tpu.matmul %90, %1, %cst_66 {dimension_numbers = #tpu.dot_dimension_numbers<[1], [0], [0], [1], [0, 0, 1, 1], [], []>} : vector<4x64xf32>, vector<64x128xf32>, vector<4x128xf32> -> vector<4x128xf32>
      %c0_67 = arith.constant 0 : index
      %c0_68 = arith.constant 0 : index
      %92 = vector.load %arg18[%c0_67, %c0_68] : memref<4x64xf32, #tpu.memory_space<vmem>>, vector<4x64xf32>
      %cst_69 = arith.constant dense<0.000000e+00> : vector<4x128xf32>
      %93 = tpu.matmul %92, %2, %cst_69 {dimension_numbers = #tpu.dot_dimension_numbers<[1], [0], [0], [1], [0, 0, 1, 1], [], []>} : vector<4x64xf32>, vector<64x128xf32>, vector<4x128xf32> -> vector<4x128xf32>
      %94 = arith.addf %91, %93 : vector<4x128xf32>
      %95 = arith.addf %94, %3 : vector<4x128xf32>
      %96 = arith.mulf %95, %12 : vector<4x128xf32>
      %97 = arith.negf %96 : vector<4x128xf32>
      %98 = math.exp %97 : vector<4x128xf32>
      %cst_70 = arith.constant 1.000000e+00 : f32
      %99 = vector.broadcast %cst_70 : f32 to vector<4x128xf32>
      %100 = arith.addf %99, %98 : vector<4x128xf32>
      %101 = arith.divf %99, %100 : vector<4x128xf32>
      %102 = arith.mulf %101, %12 : vector<4x128xf32>
      %103 = arith.addf %102, %15 : vector<4x128xf32>
      %104 = vector.extract_strided_slice %103 {offsets = [0, 0], sizes = [4, 32], strides = [1, 1]} : vector<4x128xf32> to vector<4x32xf32>
      %105 = vector.extract_strided_slice %103 {offsets = [0, 32], sizes = [4, 32], strides = [1, 1]} : vector<4x128xf32> to vector<4x32xf32>
      %106 = vector.extract_strided_slice %103 {offsets = [0, 64], sizes = [4, 32], strides = [1, 1]} : vector<4x128xf32> to vector<4x32xf32>
      %107 = vector.extract_strided_slice %103 {offsets = [0, 96], sizes = [4, 32], strides = [1, 1]} : vector<4x128xf32> to vector<4x32xf32>
      %c0_71 = arith.constant 0 : index
      %c0_72 = arith.constant 0 : index
      %108 = vector.load %arg19[%c0_71, %c0_72] : memref<4x32xf32, #tpu.memory_space<vmem>>, vector<4x32xf32>
      %109 = arith.mulf %105, %108 : vector<4x32xf32>
      %110 = arith.mulf %104, %106 : vector<4x32xf32>
      %111 = arith.addf %109, %110 : vector<4x32xf32>
      %112 = math.tanh %111 : vector<4x32xf32>
      %113 = arith.mulf %107, %112 : vector<4x32xf32>
      %c0_73 = arith.constant 0 : index
      %c0_74 = arith.constant 0 : index
      %114 = vector.load %arg19[%c0_73, %c0_74] : memref<4x32xf32, #tpu.memory_space<vmem>>, vector<4x32xf32>
      tpu.vector_store %arg19[%c0_73, %c0_74], %111 {strides = array<i32>} : memref<4x32xf32, #tpu.memory_space<vmem>>, vector<4x32xf32>,
      %115 = tpu.concatenate %113, %113 in 1 : vector<4x32xf32>, vector<4x32xf32> -> vector<4x64xf32>
      %116 = arith.mulf %115, %26 : vector<4x64xf32>
      %c0_75 = arith.constant 0 : index
      %c0_76 = arith.constant 0 : index
      %117 = vector.load %arg18[%c0_75, %c0_76] : memref<4x64xf32, #tpu.memory_space<vmem>>, vector<4x64xf32>
      tpu.vector_store %arg18[%c0_75, %c0_76], %116 {strides = array<i32>} : memref<4x64xf32, #tpu.memory_space<vmem>>, vector<4x64xf32>,
      %c0_77 = arith.constant 0 : index
      %c0_78 = arith.constant 0 : index
      %118 = vector.load %arg20[%c0_77, %c0_78] : memref<4x32xf32, #tpu.memory_space<vmem>>, vector<4x32xf32>
      %c0_79 = arith.constant 0 : index
      %c0_80 = arith.constant 0 : index
      %c0_81 = arith.constant 0 : index
      %119 = vector.load %arg3[%c0_79, %c0_80, %c0_81] : memref<8x4x32xf32, #tpu.memory_space<vmem>>, vector<1x4x32xf32>
      %120 = vector.shape_cast %119 : vector<1x4x32xf32> to vector<4x32xf32>
      %121 = arith.mulf %32, %113 : vector<4x32xf32>
      %122 = arith.mulf %120, %121 : vector<4x32xf32>
      %123 = arith.maximumf %118, %122 : vector<4x32xf32>
      %c0_82 = arith.constant 0 : index
      %c0_83 = arith.constant 0 : index
      %124 = vector.load %arg20[%c0_82, %c0_83] : memref<4x32xf32, #tpu.memory_space<vmem>>, vector<4x32xf32>
      tpu.vector_store %arg20[%c0_82, %c0_83], %123 {strides = array<i32>} : memref<4x32xf32, #tpu.memory_space<vmem>>, vector<4x32xf32>,
    } else {
    }
    %c1_i32 = arith.constant 1 : i32
    %42 = arith.cmpi sgt, %0, %c1_i32 : i32
    %43 = arith.extui %42 : i1 to i32
    %c0_i32_31 = arith.constant 0 : i32
    %44 = arith.cmpi ne, %43, %c0_i32_31 : i32
    scf.if %44 {
      %c1 = arith.constant 1 : index
      %c0_63 = arith.constant 0 : index
      %c0_64 = arith.constant 0 : index
      %89 = vector.load %arg2[%c1, %c0_63, %c0_64] : memref<8x4x64xf32, #tpu.memory_space<vmem>>, vector<1x4x64xf32>
      %90 = vector.shape_cast %89 : vector<1x4x64xf32> to vector<4x64xf32>
      %cst_65 = arith.constant dense<0.000000e+00> : vector<4x128xf32>
      %91 = tpu.matmul %90, %1, %cst_65 {dimension_numbers = #tpu.dot_dimension_numbers<[1], [0], [0], [1], [0, 0, 1, 1], [], []>} : vector<4x64xf32>, vector<64x128xf32>, vector<4x128xf32> -> vector<4x128xf32>
      %c0_66 = arith.constant 0 : index
      %c0_67 = arith.constant 0 : index
      %92 = vector.load %arg18[%c0_66, %c0_67] : memref<4x64xf32, #tpu.memory_space<vmem>>, vector<4x64xf32>
      %cst_68 = arith.constant dense<0.000000e+00> : vector<4x128xf32>
      %93 = tpu.matmul %92, %2, %cst_68 {dimension_numbers = #tpu.dot_dimension_numbers<[1], [0], [0], [1], [0, 0, 1, 1], [], []>} : vector<4x64xf32>, vector<64x128xf32>, vector<4x128xf32> -> vector<4x128xf32>
      %94 = arith.addf %91, %93 : vector<4x128xf32>
      %95 = arith.addf %94, %3 : vector<4x128xf32>
      %96 = arith.mulf %95, %12 : vector<4x128xf32>
      %97 = arith.negf %96 : vector<4x128xf32>
      %98 = math.exp %97 : vector<4x128xf32>
      %cst_69 = arith.constant 1.000000e+00 : f32
      %99 = vector.broadcast %cst_69 : f32 to vector<4x128xf32>
      %100 = arith.addf %99, %98 : vector<4x128xf32>
      %101 = arith.divf %99, %100 : vector<4x128xf32>
      %102 = arith.mulf %101, %12 : vector<4x128xf32>
      %103 = arith.addf %102, %15 : vector<4x128xf32>
      %104 = vector.extract_strided_slice %103 {offsets = [0, 0], sizes = [4, 32], strides = [1, 1]} : vector<4x128xf32> to vector<4x32xf32>
      %105 = vector.extract_strided_slice %103 {offsets = [0, 32], sizes = [4, 32], strides = [1, 1]} : vector<4x128xf32> to vector<4x32xf32>
      %106 = vector.extract_strided_slice %103 {offsets = [0, 64], sizes = [4, 32], strides = [1, 1]} : vector<4x128xf32> to vector<4x32xf32>
      %107 = vector.extract_strided_slice %103 {offsets = [0, 96], sizes = [4, 32], strides = [1, 1]} : vector<4x128xf32> to vector<4x32xf32>
      %c0_70 = arith.constant 0 : index
      %c0_71 = arith.constant 0 : index
      %108 = vector.load %arg19[%c0_70, %c0_71] : memref<4x32xf32, #tpu.memory_space<vmem>>, vector<4x32xf32>
      %109 = arith.mulf %105, %108 : vector<4x32xf32>
      %110 = arith.mulf %104, %106 : vector<4x32xf32>
      %111 = arith.addf %109, %110 : vector<4x32xf32>
      %112 = math.tanh %111 : vector<4x32xf32>
      %113 = arith.mulf %107, %112 : vector<4x32xf32>
      %c0_72 = arith.constant 0 : index
      %c0_73 = arith.constant 0 : index
      %114 = vector.load %arg19[%c0_72, %c0_73] : memref<4x32xf32, #tpu.memory_space<vmem>>, vector<4x32xf32>
      tpu.vector_store %arg19[%c0_72, %c0_73], %111 {strides = array<i32>} : memref<4x32xf32, #tpu.memory_space<vmem>>, vector<4x32xf32>,
      %115 = tpu.concatenate %113, %113 in 1 : vector<4x32xf32>, vector<4x32xf32> -> vector<4x64xf32>
      %116 = arith.mulf %115, %26 : vector<4x64xf32>
      %c0_74 = arith.constant 0 : index
      %c0_75 = arith.constant 0 : index
      %117 = vector.load %arg18[%c0_74, %c0_75] : memref<4x64xf32, #tpu.memory_space<vmem>>, vector<4x64xf32>
      tpu.vector_store %arg18[%c0_74, %c0_75], %116 {strides = array<i32>} : memref<4x64xf32, #tpu.memory_space<vmem>>, vector<4x64xf32>,
      %c0_76 = arith.constant 0 : index
      %c0_77 = arith.constant 0 : index
      %118 = vector.load %arg20[%c0_76, %c0_77] : memref<4x32xf32, #tpu.memory_space<vmem>>, vector<4x32xf32>
      %c1_78 = arith.constant 1 : index
      %c0_79 = arith.constant 0 : index
      %c0_80 = arith.constant 0 : index
      %119 = vector.load %arg3[%c1_78, %c0_79, %c0_80] : memref<8x4x32xf32, #tpu.memory_space<vmem>>, vector<1x4x32xf32>
      %120 = vector.shape_cast %119 : vector<1x4x32xf32> to vector<4x32xf32>
      %121 = arith.mulf %32, %113 : vector<4x32xf32>
      %122 = arith.mulf %120, %121 : vector<4x32xf32>
      %123 = arith.maximumf %118, %122 : vector<4x32xf32>
      %c0_81 = arith.constant 0 : index
      %c0_82 = arith.constant 0 : index
      %124 = vector.load %arg20[%c0_81, %c0_82] : memref<4x32xf32, #tpu.memory_space<vmem>>, vector<4x32xf32>
      tpu.vector_store %arg20[%c0_81, %c0_82], %123 {strides = array<i32>} : memref<4x32xf32, #tpu.memory_space<vmem>>, vector<4x32xf32>,
    } else {
    }
    %c2_i32_32 = arith.constant 2 : i32
    %45 = arith.cmpi sgt, %0, %c2_i32_32 : i32
    %46 = arith.extui %45 : i1 to i32
    %c0_i32_33 = arith.constant 0 : i32
    %47 = arith.cmpi ne, %46, %c0_i32_33 : i32
    scf.if %47 {
      %c2 = arith.constant 2 : index
      %c0_63 = arith.constant 0 : index
      %c0_64 = arith.constant 0 : index
      %89 = vector.load %arg2[%c2, %c0_63, %c0_64] : memref<8x4x64xf32, #tpu.memory_space<vmem>>, vector<1x4x64xf32>
      %90 = vector.shape_cast %89 : vector<1x4x64xf32> to vector<4x64xf32>
      %cst_65 = arith.constant dense<0.000000e+00> : vector<4x128xf32>
      %91 = tpu.matmul %90, %1, %cst_65 {dimension_numbers = #tpu.dot_dimension_numbers<[1], [0], [0], [1], [0, 0, 1, 1], [], []>} : vector<4x64xf32>, vector<64x128xf32>, vector<4x128xf32> -> vector<4x128xf32>
      %c0_66 = arith.constant 0 : index
      %c0_67 = arith.constant 0 : index
      %92 = vector.load %arg18[%c0_66, %c0_67] : memref<4x64xf32, #tpu.memory_space<vmem>>, vector<4x64xf32>
      %cst_68 = arith.constant dense<0.000000e+00> : vector<4x128xf32>
      %93 = tpu.matmul %92, %2, %cst_68 {dimension_numbers = #tpu.dot_dimension_numbers<[1], [0], [0], [1], [0, 0, 1, 1], [], []>} : vector<4x64xf32>, vector<64x128xf32>, vector<4x128xf32> -> vector<4x128xf32>
      %94 = arith.addf %91, %93 : vector<4x128xf32>
      %95 = arith.addf %94, %3 : vector<4x128xf32>
      %96 = arith.mulf %95, %12 : vector<4x128xf32>
      %97 = arith.negf %96 : vector<4x128xf32>
      %98 = math.exp %97 : vector<4x128xf32>
      %cst_69 = arith.constant 1.000000e+00 : f32
      %99 = vector.broadcast %cst_69 : f32 to vector<4x128xf32>
      %100 = arith.addf %99, %98 : vector<4x128xf32>
      %101 = arith.divf %99, %100 : vector<4x128xf32>
      %102 = arith.mulf %101, %12 : vector<4x128xf32>
      %103 = arith.addf %102, %15 : vector<4x128xf32>
      %104 = vector.extract_strided_slice %103 {offsets = [0, 0], sizes = [4, 32], strides = [1, 1]} : vector<4x128xf32> to vector<4x32xf32>
      %105 = vector.extract_strided_slice %103 {offsets = [0, 32], sizes = [4, 32], strides = [1, 1]} : vector<4x128xf32> to vector<4x32xf32>
      %106 = vector.extract_strided_slice %103 {offsets = [0, 64], sizes = [4, 32], strides = [1, 1]} : vector<4x128xf32> to vector<4x32xf32>
      %107 = vector.extract_strided_slice %103 {offsets = [0, 96], sizes = [4, 32], strides = [1, 1]} : vector<4x128xf32> to vector<4x32xf32>
      %c0_70 = arith.constant 0 : index
      %c0_71 = arith.constant 0 : index
      %108 = vector.load %arg19[%c0_70, %c0_71] : memref<4x32xf32, #tpu.memory_space<vmem>>, vector<4x32xf32>
      %109 = arith.mulf %105, %108 : vector<4x32xf32>
      %110 = arith.mulf %104, %106 : vector<4x32xf32>
      %111 = arith.addf %109, %110 : vector<4x32xf32>
      %112 = math.tanh %111 : vector<4x32xf32>
      %113 = arith.mulf %107, %112 : vector<4x32xf32>
      %c0_72 = arith.constant 0 : index
      %c0_73 = arith.constant 0 : index
      %114 = vector.load %arg19[%c0_72, %c0_73] : memref<4x32xf32, #tpu.memory_space<vmem>>, vector<4x32xf32>
      tpu.vector_store %arg19[%c0_72, %c0_73], %111 {strides = array<i32>} : memref<4x32xf32, #tpu.memory_space<vmem>>, vector<4x32xf32>,
      %115 = tpu.concatenate %113, %113 in 1 : vector<4x32xf32>, vector<4x32xf32> -> vector<4x64xf32>
      %116 = arith.mulf %115, %26 : vector<4x64xf32>
      %c0_74 = arith.constant 0 : index
      %c0_75 = arith.constant 0 : index
      %117 = vector.load %arg18[%c0_74, %c0_75] : memref<4x64xf32, #tpu.memory_space<vmem>>, vector<4x64xf32>
      tpu.vector_store %arg18[%c0_74, %c0_75], %116 {strides = array<i32>} : memref<4x64xf32, #tpu.memory_space<vmem>>, vector<4x64xf32>,
      %c0_76 = arith.constant 0 : index
      %c0_77 = arith.constant 0 : index
      %118 = vector.load %arg20[%c0_76, %c0_77] : memref<4x32xf32, #tpu.memory_space<vmem>>, vector<4x32xf32>
      %c2_78 = arith.constant 2 : index
      %c0_79 = arith.constant 0 : index
      %c0_80 = arith.constant 0 : index
      %119 = vector.load %arg3[%c2_78, %c0_79, %c0_80] : memref<8x4x32xf32, #tpu.memory_space<vmem>>, vector<1x4x32xf32>
      %120 = vector.shape_cast %119 : vector<1x4x32xf32> to vector<4x32xf32>
      %121 = arith.mulf %32, %113 : vector<4x32xf32>
      %122 = arith.mulf %120, %121 : vector<4x32xf32>
      %123 = arith.maximumf %118, %122 : vector<4x32xf32>
      %c0_81 = arith.constant 0 : index
      %c0_82 = arith.constant 0 : index
      %124 = vector.load %arg20[%c0_81, %c0_82] : memref<4x32xf32, #tpu.memory_space<vmem>>, vector<4x32xf32>
      tpu.vector_store %arg20[%c0_81, %c0_82], %123 {strides = array<i32>} : memref<4x32xf32, #tpu.memory_space<vmem>>, vector<4x32xf32>,
    } else {
    }
    %c3_i32 = arith.constant 3 : i32
    %48 = arith.cmpi sgt, %0, %c3_i32 : i32
    %49 = arith.extui %48 : i1 to i32
    %c0_i32_34 = arith.constant 0 : i32
    %50 = arith.cmpi ne, %49, %c0_i32_34 : i32
    scf.if %50 {
      %c3 = arith.constant 3 : index
      %c0_63 = arith.constant 0 : index
      %c0_64 = arith.constant 0 : index
      %89 = vector.load %arg2[%c3, %c0_63, %c0_64] : memref<8x4x64xf32, #tpu.memory_space<vmem>>, vector<1x4x64xf32>
      %90 = vector.shape_cast %89 : vector<1x4x64xf32> to vector<4x64xf32>
      %cst_65 = arith.constant dense<0.000000e+00> : vector<4x128xf32>
      %91 = tpu.matmul %90, %1, %cst_65 {dimension_numbers = #tpu.dot_dimension_numbers<[1], [0], [0], [1], [0, 0, 1, 1], [], []>} : vector<4x64xf32>, vector<64x128xf32>, vector<4x128xf32> -> vector<4x128xf32>
      %c0_66 = arith.constant 0 : index
      %c0_67 = arith.constant 0 : index
      %92 = vector.load %arg18[%c0_66, %c0_67] : memref<4x64xf32, #tpu.memory_space<vmem>>, vector<4x64xf32>
      %cst_68 = arith.constant dense<0.000000e+00> : vector<4x128xf32>
      %93 = tpu.matmul %92, %2, %cst_68 {dimension_numbers = #tpu.dot_dimension_numbers<[1], [0], [0], [1], [0, 0, 1, 1], [], []>} : vector<4x64xf32>, vector<64x128xf32>, vector<4x128xf32> -> vector<4x128xf32>
      %94 = arith.addf %91, %93 : vector<4x128xf32>
      %95 = arith.addf %94, %3 : vector<4x128xf32>
      %96 = arith.mulf %95, %12 : vector<4x128xf32>
      %97 = arith.negf %96 : vector<4x128xf32>
      %98 = math.exp %97 : vector<4x128xf32>
      %cst_69 = arith.constant 1.000000e+00 : f32
      %99 = vector.broadcast %cst_69 : f32 to vector<4x128xf32>
      %100 = arith.addf %99, %98 : vector<4x128xf32>
      %101 = arith.divf %99, %100 : vector<4x128xf32>
      %102 = arith.mulf %101, %12 : vector<4x128xf32>
      %103 = arith.addf %102, %15 : vector<4x128xf32>
      %104 = vector.extract_strided_slice %103 {offsets = [0, 0], sizes = [4, 32], strides = [1, 1]} : vector<4x128xf32> to vector<4x32xf32>
      %105 = vector.extract_strided_slice %103 {offsets = [0, 32], sizes = [4, 32], strides = [1, 1]} : vector<4x128xf32> to vector<4x32xf32>
      %106 = vector.extract_strided_slice %103 {offsets = [0, 64], sizes = [4, 32], strides = [1, 1]} : vector<4x128xf32> to vector<4x32xf32>
      %107 = vector.extract_strided_slice %103 {offsets = [0, 96], sizes = [4, 32], strides = [1, 1]} : vector<4x128xf32> to vector<4x32xf32>
      %c0_70 = arith.constant 0 : index
      %c0_71 = arith.constant 0 : index
      %108 = vector.load %arg19[%c0_70, %c0_71] : memref<4x32xf32, #tpu.memory_space<vmem>>, vector<4x32xf32>
      %109 = arith.mulf %105, %108 : vector<4x32xf32>
      %110 = arith.mulf %104, %106 : vector<4x32xf32>
      %111 = arith.addf %109, %110 : vector<4x32xf32>
      %112 = math.tanh %111 : vector<4x32xf32>
      %113 = arith.mulf %107, %112 : vector<4x32xf32>
      %c0_72 = arith.constant 0 : index
      %c0_73 = arith.constant 0 : index
      %114 = vector.load %arg19[%c0_72, %c0_73] : memref<4x32xf32, #tpu.memory_space<vmem>>, vector<4x32xf32>
      tpu.vector_store %arg19[%c0_72, %c0_73], %111 {strides = array<i32>} : memref<4x32xf32, #tpu.memory_space<vmem>>, vector<4x32xf32>,
      %115 = tpu.concatenate %113, %113 in 1 : vector<4x32xf32>, vector<4x32xf32> -> vector<4x64xf32>
      %116 = arith.mulf %115, %26 : vector<4x64xf32>
      %c0_74 = arith.constant 0 : index
      %c0_75 = arith.constant 0 : index
      %117 = vector.load %arg18[%c0_74, %c0_75] : memref<4x64xf32, #tpu.memory_space<vmem>>, vector<4x64xf32>
      tpu.vector_store %arg18[%c0_74, %c0_75], %116 {strides = array<i32>} : memref<4x64xf32, #tpu.memory_space<vmem>>, vector<4x64xf32>,
      %c0_76 = arith.constant 0 : index
      %c0_77 = arith.constant 0 : index
      %118 = vector.load %arg20[%c0_76, %c0_77] : memref<4x32xf32, #tpu.memory_space<vmem>>, vector<4x32xf32>
      %c3_78 = arith.constant 3 : index
      %c0_79 = arith.constant 0 : index
      %c0_80 = arith.constant 0 : index
      %119 = vector.load %arg3[%c3_78, %c0_79, %c0_80] : memref<8x4x32xf32, #tpu.memory_space<vmem>>, vector<1x4x32xf32>
      %120 = vector.shape_cast %119 : vector<1x4x32xf32> to vector<4x32xf32>
      %121 = arith.mulf %32, %113 : vector<4x32xf32>
      %122 = arith.mulf %120, %121 : vector<4x32xf32>
      %123 = arith.maximumf %118, %122 : vector<4x32xf32>
      %c0_81 = arith.constant 0 : index
      %c0_82 = arith.constant 0 : index
      %124 = vector.load %arg20[%c0_81, %c0_82] : memref<4x32xf32, #tpu.memory_space<vmem>>, vector<4x32xf32>
      tpu.vector_store %arg20[%c0_81, %c0_82], %123 {strides = array<i32>} : memref<4x32xf32, #tpu.memory_space<vmem>>, vector<4x32xf32>,
    } else {
    }
    %c4_i32 = arith.constant 4 : i32
    %51 = arith.cmpi sgt, %0, %c4_i32 : i32
    %52 = arith.extui %51 : i1 to i32
    %c0_i32_35 = arith.constant 0 : i32
    %53 = arith.cmpi ne, %52, %c0_i32_35 : i32
    scf.if %53 {
      %c4 = arith.constant 4 : index
      %c0_63 = arith.constant 0 : index
      %c0_64 = arith.constant 0 : index
      %89 = vector.load %arg2[%c4, %c0_63, %c0_64] : memref<8x4x64xf32, #tpu.memory_space<vmem>>, vector<1x4x64xf32>
      %90 = vector.shape_cast %89 : vector<1x4x64xf32> to vector<4x64xf32>
      %cst_65 = arith.constant dense<0.000000e+00> : vector<4x128xf32>
      %91 = tpu.matmul %90, %1, %cst_65 {dimension_numbers = #tpu.dot_dimension_numbers<[1], [0], [0], [1], [0, 0, 1, 1], [], []>} : vector<4x64xf32>, vector<64x128xf32>, vector<4x128xf32> -> vector<4x128xf32>
      %c0_66 = arith.constant 0 : index
      %c0_67 = arith.constant 0 : index
      %92 = vector.load %arg18[%c0_66, %c0_67] : memref<4x64xf32, #tpu.memory_space<vmem>>, vector<4x64xf32>
      %cst_68 = arith.constant dense<0.000000e+00> : vector<4x128xf32>
      %93 = tpu.matmul %92, %2, %cst_68 {dimension_numbers = #tpu.dot_dimension_numbers<[1], [0], [0], [1], [0, 0, 1, 1], [], []>} : vector<4x64xf32>, vector<64x128xf32>, vector<4x128xf32> -> vector<4x128xf32>
      %94 = arith.addf %91, %93 : vector<4x128xf32>
      %95 = arith.addf %94, %3 : vector<4x128xf32>
      %96 = arith.mulf %95, %12 : vector<4x128xf32>
      %97 = arith.negf %96 : vector<4x128xf32>
      %98 = math.exp %97 : vector<4x128xf32>
      %cst_69 = arith.constant 1.000000e+00 : f32
      %99 = vector.broadcast %cst_69 : f32 to vector<4x128xf32>
      %100 = arith.addf %99, %98 : vector<4x128xf32>
      %101 = arith.divf %99, %100 : vector<4x128xf32>
      %102 = arith.mulf %101, %12 : vector<4x128xf32>
      %103 = arith.addf %102, %15 : vector<4x128xf32>
      %104 = vector.extract_strided_slice %103 {offsets = [0, 0], sizes = [4, 32], strides = [1, 1]} : vector<4x128xf32> to vector<4x32xf32>
      %105 = vector.extract_strided_slice %103 {offsets = [0, 32], sizes = [4, 32], strides = [1, 1]} : vector<4x128xf32> to vector<4x32xf32>
      %106 = vector.extract_strided_slice %103 {offsets = [0, 64], sizes = [4, 32], strides = [1, 1]} : vector<4x128xf32> to vector<4x32xf32>
      %107 = vector.extract_strided_slice %103 {offsets = [0, 96], sizes = [4, 32], strides = [1, 1]} : vector<4x128xf32> to vector<4x32xf32>
      %c0_70 = arith.constant 0 : index
      %c0_71 = arith.constant 0 : index
      %108 = vector.load %arg19[%c0_70, %c0_71] : memref<4x32xf32, #tpu.memory_space<vmem>>, vector<4x32xf32>
      %109 = arith.mulf %105, %108 : vector<4x32xf32>
      %110 = arith.mulf %104, %106 : vector<4x32xf32>
      %111 = arith.addf %109, %110 : vector<4x32xf32>
      %112 = math.tanh %111 : vector<4x32xf32>
      %113 = arith.mulf %107, %112 : vector<4x32xf32>
      %c0_72 = arith.constant 0 : index
      %c0_73 = arith.constant 0 : index
      %114 = vector.load %arg19[%c0_72, %c0_73] : memref<4x32xf32, #tpu.memory_space<vmem>>, vector<4x32xf32>
      tpu.vector_store %arg19[%c0_72, %c0_73], %111 {strides = array<i32>} : memref<4x32xf32, #tpu.memory_space<vmem>>, vector<4x32xf32>,
      %115 = tpu.concatenate %113, %113 in 1 : vector<4x32xf32>, vector<4x32xf32> -> vector<4x64xf32>
      %116 = arith.mulf %115, %26 : vector<4x64xf32>
      %c0_74 = arith.constant 0 : index
      %c0_75 = arith.constant 0 : index
      %117 = vector.load %arg18[%c0_74, %c0_75] : memref<4x64xf32, #tpu.memory_space<vmem>>, vector<4x64xf32>
      tpu.vector_store %arg18[%c0_74, %c0_75], %116 {strides = array<i32>} : memref<4x64xf32, #tpu.memory_space<vmem>>, vector<4x64xf32>,
      %c0_76 = arith.constant 0 : index
      %c0_77 = arith.constant 0 : index
      %118 = vector.load %arg20[%c0_76, %c0_77] : memref<4x32xf32, #tpu.memory_space<vmem>>, vector<4x32xf32>
      %c4_78 = arith.constant 4 : index
      %c0_79 = arith.constant 0 : index
      %c0_80 = arith.constant 0 : index
      %119 = vector.load %arg3[%c4_78, %c0_79, %c0_80] : memref<8x4x32xf32, #tpu.memory_space<vmem>>, vector<1x4x32xf32>
      %120 = vector.shape_cast %119 : vector<1x4x32xf32> to vector<4x32xf32>
      %121 = arith.mulf %32, %113 : vector<4x32xf32>
      %122 = arith.mulf %120, %121 : vector<4x32xf32>
      %123 = arith.maximumf %118, %122 : vector<4x32xf32>
      %c0_81 = arith.constant 0 : index
      %c0_82 = arith.constant 0 : index
      %124 = vector.load %arg20[%c0_81, %c0_82] : memref<4x32xf32, #tpu.memory_space<vmem>>, vector<4x32xf32>
      tpu.vector_store %arg20[%c0_81, %c0_82], %123 {strides = array<i32>} : memref<4x32xf32, #tpu.memory_space<vmem>>, vector<4x32xf32>,
    } else {
    }
    %c5_i32 = arith.constant 5 : i32
    %54 = arith.cmpi sgt, %0, %c5_i32 : i32
    %55 = arith.extui %54 : i1 to i32
    %c0_i32_36 = arith.constant 0 : i32
    %56 = arith.cmpi ne, %55, %c0_i32_36 : i32
    scf.if %56 {
      %c5 = arith.constant 5 : index
      %c0_63 = arith.constant 0 : index
      %c0_64 = arith.constant 0 : index
      %89 = vector.load %arg2[%c5, %c0_63, %c0_64] : memref<8x4x64xf32, #tpu.memory_space<vmem>>, vector<1x4x64xf32>
      %90 = vector.shape_cast %89 : vector<1x4x64xf32> to vector<4x64xf32>
      %cst_65 = arith.constant dense<0.000000e+00> : vector<4x128xf32>
      %91 = tpu.matmul %90, %1, %cst_65 {dimension_numbers = #tpu.dot_dimension_numbers<[1], [0], [0], [1], [0, 0, 1, 1], [], []>} : vector<4x64xf32>, vector<64x128xf32>, vector<4x128xf32> -> vector<4x128xf32>
      %c0_66 = arith.constant 0 : index
      %c0_67 = arith.constant 0 : index
      %92 = vector.load %arg18[%c0_66, %c0_67] : memref<4x64xf32, #tpu.memory_space<vmem>>, vector<4x64xf32>
      %cst_68 = arith.constant dense<0.000000e+00> : vector<4x128xf32>
      %93 = tpu.matmul %92, %2, %cst_68 {dimension_numbers = #tpu.dot_dimension_numbers<[1], [0], [0], [1], [0, 0, 1, 1], [], []>} : vector<4x64xf32>, vector<64x128xf32>, vector<4x128xf32> -> vector<4x128xf32>
      %94 = arith.addf %91, %93 : vector<4x128xf32>
      %95 = arith.addf %94, %3 : vector<4x128xf32>
      %96 = arith.mulf %95, %12 : vector<4x128xf32>
      %97 = arith.negf %96 : vector<4x128xf32>
      %98 = math.exp %97 : vector<4x128xf32>
      %cst_69 = arith.constant 1.000000e+00 : f32
      %99 = vector.broadcast %cst_69 : f32 to vector<4x128xf32>
      %100 = arith.addf %99, %98 : vector<4x128xf32>
      %101 = arith.divf %99, %100 : vector<4x128xf32>
      %102 = arith.mulf %101, %12 : vector<4x128xf32>
      %103 = arith.addf %102, %15 : vector<4x128xf32>
      %104 = vector.extract_strided_slice %103 {offsets = [0, 0], sizes = [4, 32], strides = [1, 1]} : vector<4x128xf32> to vector<4x32xf32>
      %105 = vector.extract_strided_slice %103 {offsets = [0, 32], sizes = [4, 32], strides = [1, 1]} : vector<4x128xf32> to vector<4x32xf32>
      %106 = vector.extract_strided_slice %103 {offsets = [0, 64], sizes = [4, 32], strides = [1, 1]} : vector<4x128xf32> to vector<4x32xf32>
      %107 = vector.extract_strided_slice %103 {offsets = [0, 96], sizes = [4, 32], strides = [1, 1]} : vector<4x128xf32> to vector<4x32xf32>
      %c0_70 = arith.constant 0 : index
      %c0_71 = arith.constant 0 : index
      %108 = vector.load %arg19[%c0_70, %c0_71] : memref<4x32xf32, #tpu.memory_space<vmem>>, vector<4x32xf32>
      %109 = arith.mulf %105, %108 : vector<4x32xf32>
      %110 = arith.mulf %104, %106 : vector<4x32xf32>
      %111 = arith.addf %109, %110 : vector<4x32xf32>
      %112 = math.tanh %111 : vector<4x32xf32>
      %113 = arith.mulf %107, %112 : vector<4x32xf32>
      %c0_72 = arith.constant 0 : index
      %c0_73 = arith.constant 0 : index
      %114 = vector.load %arg19[%c0_72, %c0_73] : memref<4x32xf32, #tpu.memory_space<vmem>>, vector<4x32xf32>
      tpu.vector_store %arg19[%c0_72, %c0_73], %111 {strides = array<i32>} : memref<4x32xf32, #tpu.memory_space<vmem>>, vector<4x32xf32>,
      %115 = tpu.concatenate %113, %113 in 1 : vector<4x32xf32>, vector<4x32xf32> -> vector<4x64xf32>
      %116 = arith.mulf %115, %26 : vector<4x64xf32>
      %c0_74 = arith.constant 0 : index
      %c0_75 = arith.constant 0 : index
      %117 = vector.load %arg18[%c0_74, %c0_75] : memref<4x64xf32, #tpu.memory_space<vmem>>, vector<4x64xf32>
      tpu.vector_store %arg18[%c0_74, %c0_75], %116 {strides = array<i32>} : memref<4x64xf32, #tpu.memory_space<vmem>>, vector<4x64xf32>,
      %c0_76 = arith.constant 0 : index
      %c0_77 = arith.constant 0 : index
      %118 = vector.load %arg20[%c0_76, %c0_77] : memref<4x32xf32, #tpu.memory_space<vmem>>, vector<4x32xf32>
      %c5_78 = arith.constant 5 : index
      %c0_79 = arith.constant 0 : index
      %c0_80 = arith.constant 0 : index
      %119 = vector.load %arg3[%c5_78, %c0_79, %c0_80] : memref<8x4x32xf32, #tpu.memory_space<vmem>>, vector<1x4x32xf32>
      %120 = vector.shape_cast %119 : vector<1x4x32xf32> to vector<4x32xf32>
      %121 = arith.mulf %32, %113 : vector<4x32xf32>
      %122 = arith.mulf %120, %121 : vector<4x32xf32>
      %123 = arith.maximumf %118, %122 : vector<4x32xf32>
      %c0_81 = arith.constant 0 : index
      %c0_82 = arith.constant 0 : index
      %124 = vector.load %arg20[%c0_81, %c0_82] : memref<4x32xf32, #tpu.memory_space<vmem>>, vector<4x32xf32>
      tpu.vector_store %arg20[%c0_81, %c0_82], %123 {strides = array<i32>} : memref<4x32xf32, #tpu.memory_space<vmem>>, vector<4x32xf32>,
    } else {
    }
    %c6_i32 = arith.constant 6 : i32
    %57 = arith.cmpi sgt, %0, %c6_i32 : i32
    %58 = arith.extui %57 : i1 to i32
    %c0_i32_37 = arith.constant 0 : i32
    %59 = arith.cmpi ne, %58, %c0_i32_37 : i32
    scf.if %59 {
      %c6 = arith.constant 6 : index
      %c0_63 = arith.constant 0 : index
      %c0_64 = arith.constant 0 : index
      %89 = vector.load %arg2[%c6, %c0_63, %c0_64] : memref<8x4x64xf32, #tpu.memory_space<vmem>>, vector<1x4x64xf32>
      %90 = vector.shape_cast %89 : vector<1x4x64xf32> to vector<4x64xf32>
      %cst_65 = arith.constant dense<0.000000e+00> : vector<4x128xf32>
      %91 = tpu.matmul %90, %1, %cst_65 {dimension_numbers = #tpu.dot_dimension_numbers<[1], [0], [0], [1], [0, 0, 1, 1], [], []>} : vector<4x64xf32>, vector<64x128xf32>, vector<4x128xf32> -> vector<4x128xf32>
      %c0_66 = arith.constant 0 : index
      %c0_67 = arith.constant 0 : index
      %92 = vector.load %arg18[%c0_66, %c0_67] : memref<4x64xf32, #tpu.memory_space<vmem>>, vector<4x64xf32>
      %cst_68 = arith.constant dense<0.000000e+00> : vector<4x128xf32>
      %93 = tpu.matmul %92, %2, %cst_68 {dimension_numbers = #tpu.dot_dimension_numbers<[1], [0], [0], [1], [0, 0, 1, 1], [], []>} : vector<4x64xf32>, vector<64x128xf32>, vector<4x128xf32> -> vector<4x128xf32>
      %94 = arith.addf %91, %93 : vector<4x128xf32>
      %95 = arith.addf %94, %3 : vector<4x128xf32>
      %96 = arith.mulf %95, %12 : vector<4x128xf32>
      %97 = arith.negf %96 : vector<4x128xf32>
      %98 = math.exp %97 : vector<4x128xf32>
      %cst_69 = arith.constant 1.000000e+00 : f32
      %99 = vector.broadcast %cst_69 : f32 to vector<4x128xf32>
      %100 = arith.addf %99, %98 : vector<4x128xf32>
      %101 = arith.divf %99, %100 : vector<4x128xf32>
      %102 = arith.mulf %101, %12 : vector<4x128xf32>
      %103 = arith.addf %102, %15 : vector<4x128xf32>
      %104 = vector.extract_strided_slice %103 {offsets = [0, 0], sizes = [4, 32], strides = [1, 1]} : vector<4x128xf32> to vector<4x32xf32>
      %105 = vector.extract_strided_slice %103 {offsets = [0, 32], sizes = [4, 32], strides = [1, 1]} : vector<4x128xf32> to vector<4x32xf32>
      %106 = vector.extract_strided_slice %103 {offsets = [0, 64], sizes = [4, 32], strides = [1, 1]} : vector<4x128xf32> to vector<4x32xf32>
      %107 = vector.extract_strided_slice %103 {offsets = [0, 96], sizes = [4, 32], strides = [1, 1]} : vector<4x128xf32> to vector<4x32xf32>
      %c0_70 = arith.constant 0 : index
      %c0_71 = arith.constant 0 : index
      %108 = vector.load %arg19[%c0_70, %c0_71] : memref<4x32xf32, #tpu.memory_space<vmem>>, vector<4x32xf32>
      %109 = arith.mulf %105, %108 : vector<4x32xf32>
      %110 = arith.mulf %104, %106 : vector<4x32xf32>
      %111 = arith.addf %109, %110 : vector<4x32xf32>
      %112 = math.tanh %111 : vector<4x32xf32>
      %113 = arith.mulf %107, %112 : vector<4x32xf32>
      %c0_72 = arith.constant 0 : index
      %c0_73 = arith.constant 0 : index
      %114 = vector.load %arg19[%c0_72, %c0_73] : memref<4x32xf32, #tpu.memory_space<vmem>>, vector<4x32xf32>
      tpu.vector_store %arg19[%c0_72, %c0_73], %111 {strides = array<i32>} : memref<4x32xf32, #tpu.memory_space<vmem>>, vector<4x32xf32>,
      %115 = tpu.concatenate %113, %113 in 1 : vector<4x32xf32>, vector<4x32xf32> -> vector<4x64xf32>
      %116 = arith.mulf %115, %26 : vector<4x64xf32>
      %c0_74 = arith.constant 0 : index
      %c0_75 = arith.constant 0 : index
      %117 = vector.load %arg18[%c0_74, %c0_75] : memref<4x64xf32, #tpu.memory_space<vmem>>, vector<4x64xf32>
      tpu.vector_store %arg18[%c0_74, %c0_75], %116 {strides = array<i32>} : memref<4x64xf32, #tpu.memory_space<vmem>>, vector<4x64xf32>,
      %c0_76 = arith.constant 0 : index
      %c0_77 = arith.constant 0 : index
      %118 = vector.load %arg20[%c0_76, %c0_77] : memref<4x32xf32, #tpu.memory_space<vmem>>, vector<4x32xf32>
      %c6_78 = arith.constant 6 : index
      %c0_79 = arith.constant 0 : index
      %c0_80 = arith.constant 0 : index
      %119 = vector.load %arg3[%c6_78, %c0_79, %c0_80] : memref<8x4x32xf32, #tpu.memory_space<vmem>>, vector<1x4x32xf32>
      %120 = vector.shape_cast %119 : vector<1x4x32xf32> to vector<4x32xf32>
      %121 = arith.mulf %32, %113 : vector<4x32xf32>
      %122 = arith.mulf %120, %121 : vector<4x32xf32>
      %123 = arith.maximumf %118, %122 : vector<4x32xf32>
      %c0_81 = arith.constant 0 : index
      %c0_82 = arith.constant 0 : index
      %124 = vector.load %arg20[%c0_81, %c0_82] : memref<4x32xf32, #tpu.memory_space<vmem>>, vector<4x32xf32>
      tpu.vector_store %arg20[%c0_81, %c0_82], %123 {strides = array<i32>} : memref<4x32xf32, #tpu.memory_space<vmem>>, vector<4x32xf32>,
    } else {
    }
    %c7_i32 = arith.constant 7 : i32
    %60 = arith.cmpi sgt, %0, %c7_i32 : i32
    %61 = arith.extui %60 : i1 to i32
    %c0_i32_38 = arith.constant 0 : i32
    %62 = arith.cmpi ne, %61, %c0_i32_38 : i32
    scf.if %62 {
      %c7 = arith.constant 7 : index
      %c0_63 = arith.constant 0 : index
      %c0_64 = arith.constant 0 : index
      %89 = vector.load %arg2[%c7, %c0_63, %c0_64] : memref<8x4x64xf32, #tpu.memory_space<vmem>>, vector<1x4x64xf32>
      %90 = vector.shape_cast %89 : vector<1x4x64xf32> to vector<4x64xf32>
      %cst_65 = arith.constant dense<0.000000e+00> : vector<4x128xf32>
      %91 = tpu.matmul %90, %1, %cst_65 {dimension_numbers = #tpu.dot_dimension_numbers<[1], [0], [0], [1], [0, 0, 1, 1], [], []>} : vector<4x64xf32>, vector<64x128xf32>, vector<4x128xf32> -> vector<4x128xf32>
      %c0_66 = arith.constant 0 : index
      %c0_67 = arith.constant 0 : index
      %92 = vector.load %arg18[%c0_66, %c0_67] : memref<4x64xf32, #tpu.memory_space<vmem>>, vector<4x64xf32>
      %cst_68 = arith.constant dense<0.000000e+00> : vector<4x128xf32>
      %93 = tpu.matmul %92, %2, %cst_68 {dimension_numbers = #tpu.dot_dimension_numbers<[1], [0], [0], [1], [0, 0, 1, 1], [], []>} : vector<4x64xf32>, vector<64x128xf32>, vector<4x128xf32> -> vector<4x128xf32>
      %94 = arith.addf %91, %93 : vector<4x128xf32>
      %95 = arith.addf %94, %3 : vector<4x128xf32>
      %96 = arith.mulf %95, %12 : vector<4x128xf32>
      %97 = arith.negf %96 : vector<4x128xf32>
      %98 = math.exp %97 : vector<4x128xf32>
      %cst_69 = arith.constant 1.000000e+00 : f32
      %99 = vector.broadcast %cst_69 : f32 to vector<4x128xf32>
      %100 = arith.addf %99, %98 : vector<4x128xf32>
      %101 = arith.divf %99, %100 : vector<4x128xf32>
      %102 = arith.mulf %101, %12 : vector<4x128xf32>
      %103 = arith.addf %102, %15 : vector<4x128xf32>
      %104 = vector.extract_strided_slice %103 {offsets = [0, 0], sizes = [4, 32], strides = [1, 1]} : vector<4x128xf32> to vector<4x32xf32>
      %105 = vector.extract_strided_slice %103 {offsets = [0, 32], sizes = [4, 32], strides = [1, 1]} : vector<4x128xf32> to vector<4x32xf32>
      %106 = vector.extract_strided_slice %103 {offsets = [0, 64], sizes = [4, 32], strides = [1, 1]} : vector<4x128xf32> to vector<4x32xf32>
      %107 = vector.extract_strided_slice %103 {offsets = [0, 96], sizes = [4, 32], strides = [1, 1]} : vector<4x128xf32> to vector<4x32xf32>
      %c0_70 = arith.constant 0 : index
      %c0_71 = arith.constant 0 : index
      %108 = vector.load %arg19[%c0_70, %c0_71] : memref<4x32xf32, #tpu.memory_space<vmem>>, vector<4x32xf32>
      %109 = arith.mulf %105, %108 : vector<4x32xf32>
      %110 = arith.mulf %104, %106 : vector<4x32xf32>
      %111 = arith.addf %109, %110 : vector<4x32xf32>
      %112 = math.tanh %111 : vector<4x32xf32>
      %113 = arith.mulf %107, %112 : vector<4x32xf32>
      %c0_72 = arith.constant 0 : index
      %c0_73 = arith.constant 0 : index
      %114 = vector.load %arg19[%c0_72, %c0_73] : memref<4x32xf32, #tpu.memory_space<vmem>>, vector<4x32xf32>
      tpu.vector_store %arg19[%c0_72, %c0_73], %111 {strides = array<i32>} : memref<4x32xf32, #tpu.memory_space<vmem>>, vector<4x32xf32>,
      %115 = tpu.concatenate %113, %113 in 1 : vector<4x32xf32>, vector<4x32xf32> -> vector<4x64xf32>
      %116 = arith.mulf %115, %26 : vector<4x64xf32>
      %c0_74 = arith.constant 0 : index
      %c0_75 = arith.constant 0 : index
      %117 = vector.load %arg18[%c0_74, %c0_75] : memref<4x64xf32, #tpu.memory_space<vmem>>, vector<4x64xf32>
      tpu.vector_store %arg18[%c0_74, %c0_75], %116 {strides = array<i32>} : memref<4x64xf32, #tpu.memory_space<vmem>>, vector<4x64xf32>,
      %c0_76 = arith.constant 0 : index
      %c0_77 = arith.constant 0 : index
      %118 = vector.load %arg20[%c0_76, %c0_77] : memref<4x32xf32, #tpu.memory_space<vmem>>, vector<4x32xf32>
      %c7_78 = arith.constant 7 : index
      %c0_79 = arith.constant 0 : index
      %c0_80 = arith.constant 0 : index
      %119 = vector.load %arg3[%c7_78, %c0_79, %c0_80] : memref<8x4x32xf32, #tpu.memory_space<vmem>>, vector<1x4x32xf32>
      %120 = vector.shape_cast %119 : vector<1x4x32xf32> to vector<4x32xf32>
      %121 = arith.mulf %32, %113 : vector<4x32xf32>
      %122 = arith.mulf %120, %121 : vector<4x32xf32>
      %123 = arith.maximumf %118, %122 : vector<4x32xf32>
      %c0_81 = arith.constant 0 : index
      %c0_82 = arith.constant 0 : index
      %124 = vector.load %arg20[%c0_81, %c0_82] : memref<4x32xf32, #tpu.memory_space<vmem>>, vector<4x32xf32>
      tpu.vector_store %arg20[%c0_81, %c0_82], %123 {strides = array<i32>} : memref<4x32xf32, #tpu.memory_space<vmem>>, vector<4x32xf32>,
    } else {
    }
    %c0_39 = arith.constant 0 : index
    %c0_40 = arith.constant 0 : index
    %63 = vector.load %arg20[%c0_39, %c0_40] : memref<4x32xf32, #tpu.memory_space<vmem>>, vector<4x32xf32>
    %64 = vector.extract_strided_slice %63 {offsets = [0, 0], sizes = [2, 32], strides = [1, 1]} : vector<4x32xf32> to vector<2x32xf32>
    %65 = vector.extract_strided_slice %63 {offsets = [2, 0], sizes = [2, 32], strides = [1, 1]} : vector<4x32xf32> to vector<2x32xf32>
    %c0_41 = arith.constant 0 : index
    %c0_42 = arith.constant 0 : index
    %66 = vector.load %arg4[%c0_41, %c0_42] : memref<2x96xf32, #tpu.memory_space<vmem>>, vector<2x96xf32>
    %c0_43 = arith.constant 0 : index
    %c0_44 = arith.constant 0 : index
    %67 = vector.load %arg11[%c0_43, %c0_44] : memref<96x128xf32, #tpu.memory_space<vmem>>, vector<96x128xf32>
    %cst_45 = arith.constant dense<0.000000e+00> : vector<2x128xf32>
    %68 = tpu.matmul %66, %67, %cst_45 {dimension_numbers = #tpu.dot_dimension_numbers<[1], [0], [0], [1], [0, 0, 1, 1], [], []>} : vector<2x96xf32>, vector<96x128xf32>, vector<2x128xf32> -> vector<2x128xf32>
    %c0_46 = arith.constant 0 : index
    %c0_47 = arith.constant 0 : index
    %69 = vector.load %arg12[%c0_46, %c0_47] : memref<32x128xf32, #tpu.memory_space<vmem>>, vector<32x128xf32>
    %cst_48 = arith.constant dense<0.000000e+00> : vector<2x128xf32>
    %70 = tpu.matmul %64, %69, %cst_48 {dimension_numbers = #tpu.dot_dimension_numbers<[1], [0], [0], [1], [0, 0, 1, 1], [], []>} : vector<2x32xf32>, vector<32x128xf32>, vector<2x128xf32> -> vector<2x128xf32>
    %71 = arith.addf %68, %70 : vector<2x128xf32>
    %c0_49 = arith.constant 0 : index
    %c0_50 = arith.constant 0 : index
    %72 = vector.load %arg13[%c0_49, %c0_50] : memref<32x128xf32, #tpu.memory_space<vmem>>, vector<32x128xf32>
    %cst_51 = arith.constant dense<0.000000e+00> : vector<2x128xf32>
    %73 = tpu.matmul %65, %72, %cst_51 {dimension_numbers = #tpu.dot_dimension_numbers<[1], [0], [0], [1], [0, 0, 1, 1], [], []>} : vector<2x32xf32>, vector<32x128xf32>, vector<2x128xf32> -> vector<2x128xf32>
    %74 = arith.addf %71, %73 : vector<2x128xf32>
    %c0_52 = arith.constant 0 : index
    %c0_53 = arith.constant 0 : index
    %75 = vector.load %arg14[%c0_52, %c0_53] : memref<1x128xf32, #tpu.memory_space<vmem>>, vector<1x128xf32>
    %76 = vector.broadcast %75 : vector<1x128xf32> to vector<2x128xf32>
    %77 = arith.addf %74, %76 : vector<2x128xf32>
    %cst_54 = arith.constant 0.000000e+00 : f32
    %78 = vector.broadcast %cst_54 : f32 to vector<2x128xf32>
    %79 = arith.cmpf ogt, %77, %78 : vector<2x128xf32>
    %cst_55 = arith.constant 0.00999999977 : f32
    %80 = vector.broadcast %cst_55 : f32 to vector<2x128xf32>
    %81 = arith.mulf %80, %77 : vector<2x128xf32>
    %82 = arith.select %79, %77, %81 : vector<2x128xi1>, vector<2x128xf32>
    %c0_56 = arith.constant 0 : index
    %c0_57 = arith.constant 0 : index
    %83 = vector.load %arg15[%c0_56, %c0_57] : memref<128x1xf32, #tpu.memory_space<vmem>>, vector<128x1xf32>
    %cst_58 = arith.constant dense<0.000000e+00> : vector<2x1xf32>
    %84 = tpu.matmul %82, %83, %cst_58 {dimension_numbers = #tpu.dot_dimension_numbers<[1], [0], [0], [1], [0, 0, 1, 1], [], []>} : vector<2x128xf32>, vector<128x1xf32>, vector<2x1xf32> -> vector<2x1xf32>
    %c0_59 = arith.constant 0 : index
    %c0_60 = arith.constant 0 : index
    %85 = vector.load %arg16[%c0_59, %c0_60] : memref<1x1xf32, #tpu.memory_space<vmem>>, vector<1x1xf32>
    %86 = vector.broadcast %85 : vector<1x1xf32> to vector<2x1xf32>
    %87 = arith.addf %84, %86 : vector<2x1xf32>
    %c0_61 = arith.constant 0 : index
    %c0_62 = arith.constant 0 : index
    %88 = vector.load %arg17[%c0_61, %c0_62] : memref<2x1xf32, #tpu.memory_space<vmem>>, vector<2x1xf32>
    tpu.vector_store %arg17[%c0_61, %c0_62], %87 {strides = array<i32>} : memref<2x1xf32, #tpu.memory_space<vmem>>, vector<2x1xf32>,
    return
  }
  func.func @transform_0(%arg0: i32, %arg1: memref<1xi32, #tpu.memory_space<smem>>) -> (i32, i32, i32) {
    %c0_i32 = arith.constant 0 : i32
    %c0_i32_0 = arith.constant 0 : i32
    %c0_i32_1 = arith.constant 0 : i32
    %c0_i32_2 = arith.constant 0 : i32
    return %c0_i32, %c0_i32_0, %c0_i32_1 : i32, i32, i32
  }
  func.func @transform_1(%arg0: i32, %arg1: memref<1xi32, #tpu.memory_space<smem>>) -> (i32, i32, i32) {
    %c0_i32 = arith.constant 0 : i32
    %c0_i32_0 = arith.constant 0 : i32
    %c0_i32_1 = arith.constant 0 : i32
    %c0_i32_2 = arith.constant 0 : i32
    return %c0_i32, %c0_i32_0, %c0_i32_1 : i32, i32, i32
  }
  func.func @transform_2(%arg0: i32, %arg1: memref<1xi32, #tpu.memory_space<smem>>) -> (i32, i32) {
    %c0_i32 = arith.constant 0 : i32
    %c0_i32_0 = arith.constant 0 : i32
    %c0_i32_1 = arith.constant 0 : i32
    return %c0_i32, %c0_i32_0 : i32, i32
  }
  func.func @transform_3(%arg0: i32, %arg1: memref<1xi32, #tpu.memory_space<smem>>) -> (i32, i32) {
    %c0_i32 = arith.constant 0 : i32
    %c0_i32_0 = arith.constant 0 : i32
    %c0_i32_1 = arith.constant 0 : i32
    return %c0_i32, %c0_i32_0 : i32, i32
  }
  func.func @transform_4(%arg0: i32, %arg1: memref<1xi32, #tpu.memory_space<smem>>) -> (i32, i32) {
    %c0_i32 = arith.constant 0 : i32
    %c0_i32_0 = arith.constant 0 : i32
    %c0_i32_1 = arith.constant 0 : i32
    return %c0_i32, %c0_i32_0 : i32, i32
  }
  func.func @transform_5(%arg0: i32, %arg1: memref<1xi32, #tpu.memory_space<smem>>) -> (i32, i32) {
    %c0_i32 = arith.constant 0 : i32
    %c0_i32_0 = arith.constant 0 : i32
    %c0_i32_1 = arith.constant 0 : i32
    return %c0_i32, %c0_i32_0 : i32, i32
  }
  func.func @transform_6(%arg0: i32, %arg1: memref<1xi32, #tpu.memory_space<smem>>) -> (i32, i32) {
    %c0_i32 = arith.constant 0 : i32
    %c0_i32_0 = arith.constant 0 : i32
    %c0_i32_1 = arith.constant 0 : i32
    return %c0_i32, %c0_i32_0 : i32, i32
  }
  func.func @transform_7(%arg0: i32, %arg1: memref<1xi32, #tpu.memory_space<smem>>) -> (i32, i32) {
    %c0_i32 = arith.constant 0 : i32
    %c0_i32_0 = arith.constant 0 : i32
    %c0_i32_1 = arith.constant 0 : i32
    return %c0_i32, %c0_i32_0 : i32, i32
  }
  func.func @transform_8(%arg0: i32, %arg1: memref<1xi32, #tpu.memory_space<smem>>) -> (i32, i32) {
    %c0_i32 = arith.constant 0 : i32
    %c0_i32_0 = arith.constant 0 : i32
    %c0_i32_1 = arith.constant 0 : i32
    return %c0_i32, %c0_i32_0 : i32, i32
  }
  func.func @transform_9(%arg0: i32, %arg1: memref<1xi32, #tpu.memory_space<smem>>) -> (i32, i32) {
    %c0_i32 = arith.constant 0 : i32
    %c0_i32_0 = arith.constant 0 : i32
    %c0_i32_1 = arith.constant 0 : i32
    return %c0_i32, %c0_i32_0 : i32, i32
  }
  func.func @transform_10(%arg0: i32, %arg1: memref<1xi32, #tpu.memory_space<smem>>) -> (i32, i32) {
    %c0_i32 = arith.constant 0 : i32
    %c0_i32_0 = arith.constant 0 : i32
    %c0_i32_1 = arith.constant 0 : i32
    return %c0_i32, %c0_i32_0 : i32, i32
  }
  func.func @transform_11(%arg0: i32, %arg1: memref<1xi32, #tpu.memory_space<smem>>) -> (i32, i32) {
    %c0_i32 = arith.constant 0 : i32
    %c0_i32_0 = arith.constant 0 : i32
    %c0_i32_1 = arith.constant 0 : i32
    return %c0_i32, %c0_i32_0 : i32, i32
  }
  func.func @transform_12(%arg0: i32, %arg1: memref<1xi32, #tpu.memory_space<smem>>) -> (i32, i32) {
    %c0_i32 = arith.constant 0 : i32
    %c0_i32_0 = arith.constant 0 : i32
    %c0_i32_1 = arith.constant 0 : i32
    return %c0_i32, %c0_i32_0 : i32, i32
  }
  func.func @transform_13(%arg0: i32, %arg1: memref<1xi32, #tpu.memory_space<smem>>) -> (i32, i32) {
    %c0_i32 = arith.constant 0 : i32
    %c0_i32_0 = arith.constant 0 : i32
    %c0_i32_1 = arith.constant 0 : i32
    return %c0_i32, %c0_i32_0 : i32, i32
  }
  func.func @transform_14(%arg0: i32, %arg1: memref<1xi32, #tpu.memory_space<smem>>) -> (i32, i32) {
    %c0_i32 = arith.constant 0 : i32
    %c0_i32_0 = arith.constant 0 : i32
    %c0_i32_1 = arith.constant 0 : i32
    return %c0_i32, %c0_i32_0 : i32, i32
  }
  func.func @transform_15(%arg0: i32, %arg1: memref<1xi32, #tpu.memory_space<smem>>) -> (i32, i32) {
    %c0_i32 = arith.constant 0 : i32
    %c0_i32_0 = arith.constant 0 : i32
    %c0_i32_1 = arith.constant 0 : i32
    return %c0_i32, %c0_i32_0 : i32, i32
  }
}

</mosaic_0001>

<bundles_post_ra>
// kernel: tpu_custom_call.1
= control target key start
LH: loop header
LB: loop body
LE: loop exit
PB: predicated region body
PF: predicated region fallthrough
CT: control target
= control target key end

     0   :  { %s3792_s0 = inlined_call_operand.<no memory space> [shape: s32[1], index: 0, kind: input, shape index: {}]   ;;  %s3793_s1 = inlined_call_operand.hbm [shape: f32[8,4,64], index: 1, kind: input, shape index: {}]   ;;  %s3794_s2 = inlined_call_operand.hbm [shape: f32[8,4,32], index: 2, kind: input, shape index: {}]   ;;  %s3795_s3 = inlined_call_operand.hbm [shape: f32[2,96], index: 3, kind: input, shape index: {}]   ;;  %s3796_s4 = inlined_call_operand.vmem [shape: f32[4,64], index: 4, kind: input, shape index: {}]   ;;  %s3797_s5 = inlined_call_operand.vmem [shape: f32[4,32], index: 5, kind: input, shape index: {}]   ;;  %s3798_s6 = inlined_call_operand.vmem [shape: f32[64,128], index: 6, kind: input, shape index: {}]   ;;  %s3799_s7 = inlined_call_operand.vmem [shape: f32[64,128], index: 7, kind: input, shape index: {}]   ;;  %s3800_s8 = inlined_call_operand.vmem [shape: f32[4,128], index: 8, kind: input, shape index: {}]   ;;  %s3801_s9 = inlined_call_operand.vmem [shape: f32[64,32], index: 9, kind: input, shape index: {}]   ;;  %s3802_s10 = inlined_call_operand.vmem [shape: f32[96,128], index: 10, kind: input, shape index: {}]   ;;  %s3803_s11 = inlined_call_operand.hbm [shape: f32[32,128], index: 11, kind: input, shape index: {}]   ;;  %s3804_s12 = inlined_call_operand.hbm [shape: f32[32,128], index: 12, kind: input, shape index: {}]   ;;  %s3805_s13 = inlined_call_operand.vmem [shape: f32[1,128], index: 13, kind: input, shape index: {}]   ;;  %s3806_s14 = inlined_call_operand.vmem [shape: f32[128,1], index: 14, kind: input, shape index: {}]   ;;  %s3807_s15 = inlined_call_operand.<no memory space> [shape: f32[1,1], index: 15, kind: input, shape index: {}]   ;;  %s3808_s16 = inlined_call_operand.vmem [shape: f32[2,1], index: 16, kind: output, shape index: {}]  }
   0x1   :  { %3809 = sst [smem:[#allocation19_spill]] %s3792_s0  ;;  %v22_v0 = vstv %s3807_s15 }
   0x2   :  { %23 = vst [vmem:[#allocation7] sm:$0x1] %v22_v0 }
   0x3   :  { %24 = vsyncpa [#allocation9], 0 }
   0x4   :  { %25 = vsyncpa [#allocation11], 0 }
   0x5   :  { %26 = vsyncpa [#allocation14], 0  ;;  %s3108_s23 = smov [#allocation10]   ;;  %s3109_s25 = smov [#allocation13]  }
   0x6   :  { %s44_s24 = sshll.u32 %s3108_s23, 4  ;;  %s80_s26 = sshll.u32 %s3109_s25, 4  ;;  %s45_s24 = int_to_ptr.vmem [resolvable:$true] %s44_s24  ;;  %s81_s26 = int_to_ptr.vmem [resolvable:$true] %s80_s26 }
   0x7   :  { %s3010_s27 = scalar_lea.vmem %s45_s24, 512  ;;  %p3015_p1 = scmp.lt.s32.totalorder %s45_s24, %s45_s24 }
   0x8   :  { %p3011_p0 = scmp.ne.s32.totalorder %s45_s24, %s3010_s27  ;;  %p3016_p2 = scmp.lt.s32.totalorder %s3010_s27, %s3010_s27 }
   0xa   :  { %p3017_p3 = por %p3016_p2, %p3015_p1 }
   0xc   :  { %p3018_p4 = pnand %p3017_p3, %p3011_p0 }
   0xe   :  { %3021 = shalt.err (!%p3018_p4)
}
   0xf   :  { %s3110_s28 = smov 64   ;;  %s3111_s29 = smov 4  }
  0x10   :  { %50 = dma.hbm_to_vmem [thread:$0]  %s3794_s2, 512, %s45_s24, [#allocation11], %s3110_s28, %s3110_s28, %s3111_s29  }
  0x11   :  { %s3030_s0 = scalar_lea.vmem %s81_s26, 512  ;;  %p3035_p6 = scmp.lt.s32.totalorder %s81_s26, %s81_s26 }
  0x12   :  { %p3031_p5 = scmp.ne.s32.totalorder %s81_s26, %s3030_s0  ;;  %p3036_p7 = scmp.lt.s32.totalorder %s3030_s0, %s3030_s0 }
  0x14   :  { %p3037_p8 = por %p3036_p7, %p3035_p6 }
  0x16   :  { %p3038_p9 = pnand %p3037_p8, %p3031_p5 }
  0x18   :  { %3041 = shalt.err (!%p3038_p9)
}
  0x19   :  { %s3112_s17 = smov 128   ;;  %s3113_s18 = smov 8  }
  0x1a   :  { %86 = dma.hbm_to_vmem [thread:$0]  %s3803_s11, 512, %s81_s26, [#allocation14], %s3112_s17, %s3112_s17, %s3113_s18  }
  0x1b   :  { %s3114_s21 = smov [#allocation8]   ;;  %s3115_s23 = smov [#allocation12]  }
  0x1c   :  { %s32_s22 = sshll.u32 %s3114_s21, 4  ;;  %s57_s2 = sshll.u32 %s3115_s23, 4  ;;  %s33_s22 = int_to_ptr.vmem [resolvable:$true] %s32_s22  ;;  %s58_s2 = int_to_ptr.vmem [resolvable:$true] %s57_s2 }
  0x1d   :  { %s3050_s24 = scalar_lea.vmem %s33_s22, 512  ;;  %p3055_p11 = scmp.lt.s32.totalorder %s33_s22, %s33_s22 }
  0x1e   :  { %p3051_p10 = scmp.ne.s32.totalorder %s33_s22, %s3050_s24  ;;  %p3056_p12 = scmp.lt.s32.totalorder %s3050_s24, %s3050_s24 }
  0x20   :  { %p3057_p13 = por %p3056_p12, %p3055_p11 }
  0x22   :  { %p3058_p0 = pnand %p3057_p13, %p3051_p10 }
  0x24   :  { %3061 = shalt.err (!%p3058_p0)
}
  0x25   :  { %38 = dma.hbm_to_vmem [thread:$0]  %s3793_s1, 512, %s33_s22, [#allocation9], %s3110_s28, %s3110_s28, %s3111_s29  }
  0x26   :  { %s3070_s15 = scalar_lea.vmem %s58_s2, 32  ;;  %p3075_p2 = scmp.lt.s32.totalorder %s58_s2, %s58_s2 }
  0x27   :  { %p3071_p1 = scmp.ne.s32.totalorder %s58_s2, %s3070_s15  ;;  %p3076_p3 = scmp.lt.s32.totalorder %s3070_s15, %s3070_s15 }
  0x29   :  { %p3077_p4 = por %p3076_p3, %p3075_p2 }
  0x2b   :  { %p3078_p5 = pnand %p3077_p4, %p3071_p1 }
  0x2d   :  { %3081 = shalt.err (!%p3078_p5)
}
  0x2e   :  { %60 = dma.hbm_to_vmem [thread:$0]  %s3795_s3, 32, %s58_s2, [#allocation11]  }
  0x2f   :  { %s3116_s30 = smov [#allocation15]  }
  0x30   :  { %s92_s0 = sshll.u32 %s3116_s30, 4  ;;  %s93_s0 = int_to_ptr.vmem [resolvable:$true] %s92_s0 }
  0x31   :  { %s3090_s19 = scalar_lea.vmem %s93_s0, 512  ;;  %p3095_p7 = scmp.lt.s32.totalorder %s93_s0, %s93_s0 }
  0x32   :  { %p3091_p6 = scmp.ne.s32.totalorder %s93_s0, %s3090_s19  ;;  %p3096_p8 = scmp.lt.s32.totalorder %s3090_s19, %s3090_s19 }
  0x34   :  { %p3097_p9 = por %p3096_p8, %p3095_p7 }
  0x36   :  { %p3098_p10 = pnand %p3097_p9, %p3091_p6 }
  0x38   :  { %3101 = shalt.err (!%p3098_p10)
}
  0x39   :  { %98 = dma.hbm_to_vmem [thread:$0]  %s3804_s12, 512, %s93_s0, [#allocation14], %s3112_s17, %s3112_s17, %s3113_s18  }
  0x3a   :  { %3102 = dma.done.wait [#allocation9], 512  }
  0x3b   :  { %3103 = vsyncadd [#allocation9], 4294966784 }
  0x3c   :  { %3104 = dma.done.wait [#allocation11], 544  }
  0x3d   :  { %3105 = vsyncadd [#allocation11], 4294966752 }
  0x3e   :  { %3106 = dma.done.wait [#allocation14], 1024  }
  0x3f   :  { %3107 = vsyncadd [#allocation14], 4294966272  ;;  %vm240_vm0 = vcmask 257024   ;;  %v138_v1 = vlaneseq  ;;  %v3117_v2 = vmov -inf   ;;  %v3118_v5 = vmov 0.0   ;;  %v3287_v10 = vld [vmem:[%s3798_s6] sm:$0xff] }
  0x40   :  { %242 = vst.msk [vmem:[#allocation4] sm:$0xf] %vm240_vm0, %v3117_v2  ;;  %2493 = vmatprep.subr.mxu0 %v3118_v5  ;;  %vm3119_vm1 = vmmov 0   ;;  %v3120_v6 = vmov 1.0   ;;  %v3292_v11 = vld [vmem:[%s3798_s6 + $0x8] sm:$0xff]  ;;  %v3297_v12 = vld [vmem:[%s3798_s6 + $0x10] sm:$0xff] }
  0x41   :  { %v139_v3 = vand.u32 127, %v138_v1  ;;  %v146_v4 = vshrl.u32 %v138_v1, 7  ;;  %2509 = vmatprep.mubr.msk.f32.mxu0 %vm3119_vm1, %v3118_v5  ;;  %v3302_v13 = vld [vmem:[%s3798_s6 + $0x18] sm:$0xff]  ;;  %v3307_v14 = vld [vmem:[%s3798_s6 + $0x20] sm:$0xff]  ;;  %v3312_v15 = vld [vmem:[%s3798_s6 + $0x28] sm:$0xff]  ;;  %vm237_vm8 = vcmask 519168  }
  0x42   :  { %v3317_v16 = vld [vmem:[%s3798_s6 + $0x30] sm:$0xff]  ;;  %v3322_v17 = vld [vmem:[%s3798_s6 + $0x38] sm:$0xff]  ;;  %v3327_v18 = vld [vmem:[%s3799_s7] sm:$0xff]  ;;  %vm3121_vm9 = vmmov 1   ;;  %vm161_vm11 = vcmask 523264   ;;  %s3812_s23 = sld [smem:[#allocation19_spill]] }
  0x43   :  { %vm140_vm2 = vcmp.ge.s32.totalorder %v139_v3, 64  ;;  %vm141_vm3 = vcmp.lt.s32.totalorder %v139_v3, 96  ;;  %vm147_vm4 = vcmp.lt.s32.totalorder %v146_v4, 2  ;;  %vm148_vm5 = vcmp.lt.s32.totalorder %v139_v3, 32  ;;  %v3332_v19 = vld [vmem:[%s3799_s7 + $0x8] sm:$0xff]  ;;  %v3337_v20 = vld [vmem:[%s3799_s7 + $0x10] sm:$0xff] }
  0x44   :  { %vm142_vm6 = vmand %vm140_vm2, %vm141_vm3  ;;  %v3342_v21 = vld [vmem:[%s3799_s7 + $0x18] sm:$0xff]  ;;  %v3347_v22 = vld [vmem:[%s3799_s7 + $0x20] sm:$0xff] }
  0x45   :  { %v3275_v7 = vsel %vm142_vm6, 2.0, %v3120_v6  ;;  %v3278_v8 = vsel %vm142_vm6, -1.0, %v3118_v5  ;;  %vm3280_vm7 = vmxor %vm147_vm4, %vm148_vm5  ;;  %v3352_v23 = vld [vmem:[%s3799_s7 + $0x28] sm:$0xff]  ;;  %v3357_v24 = vld [vmem:[%s3799_s7 + $0x30] sm:$0xff] }
  0x46   :  { %v3362_v25 = vld [vmem:[%s3799_s7 + $0x38] sm:$0xff]  ;;  %v3367_v26 = vld [vmem:[%s3800_s8] sm:$0xf]  ;;  %vm150_vm10 = vmxor %vm3280_vm7, %vm3121_vm9 }
  0x47   :  { %v236_v27 = vld [vmem:[%s3796_s4] sm:$0xf]  ;;  %v160_v29 = vld [vmem:[%s3801_s9 + $0x38] sm:$0xff]  ;;  %v3383_v30 = vsel %vm150_vm10, 1.0, %v3118_v5  ;;  %v159_v31 = vld [vmem:[%s3801_s9 + $0x30] sm:$0xff] }
  0x48   :  { %238 = vst.msk [vmem:[#allocation2] sm:$0xf] %vm237_vm8, %v236_v27  ;;  %v239_v28 = vld [vmem:[%s3797_s5] sm:$0xf]  ;;  %2494 = vmatpush3.msra.mxu0 %v160_v29  ;;  %v158_v32 = vld [vmem:[%s3801_s9 + $0x28] sm:$0xff]  ;;  %v156_v34 = vld [vmem:[%s3801_s9 + $0x18] sm:$0xff] }
  0x49   :  { %241 = vst.msk [vmem:[#allocation3] sm:$0xf] %vm240_vm0, %v239_v28  ;;  %2495 = vmatprep.subr.mxu0 %v3118_v5  ;;  %v157_v33 = vld [vmem:[%s3801_s9 + $0x20] sm:$0xff]  ;;  %v155_v35 = vld [vmem:[%s3801_s9 + $0x10] sm:$0xff]  ;;  %v154_v36 = vld [vmem:[%s3801_s9 + $0x8] sm:$0xff]  ;;  %p2263_p11 = scmp.le.s32.totalorder %s3812_s23, 0 }
  0x4a   :  { %2496 = vmatpush3.msra.mxu0 %v159_v31  ;;  %v153_v37 = vld [vmem:[%s3801_s9] sm:$0xff]  ;;  %v152_v38 = vld [vmem:[#allocation8] sm:$0xf]  ;;  %s3124_s9 = smov (!%p2263_p11), 64   ;;  %s3125_s2 = smov (!%p2263_p11), 32  }
  0x4b   :  { %2497 = vmatprep.subr.mxu0 %v3118_v5  ;;  %s3126_s24 = smov (!%p2263_p11), 96  }
  0x4c   :  { %2498 = vmatpush3.msra.mxu0 %v158_v32 }
  0x4d   :  { %2499 = vmatprep.subr.mxu0 %v3118_v5 }
  0x4e   :  { %2500 = vmatpush3.msra.mxu0 %v157_v33 }
  0x4f   :  { %2501 = vmatprep.subr.mxu0 %v3118_v5 }
  0x50   :  { %2502 = vmatpush3.msra.mxu0 %v156_v34 }
  0x51   :  { %2503 = vmatprep.subr.mxu0 %v3118_v5 }
  0x52   :  { %2504 = vmatpush3.msra.mxu0 %v155_v35 }
  0x53   :  { %2505 = vmatprep.subr.mxu0 %v3118_v5 }
  0x54   :  { %2506 = vmatpush3.msra.mxu0 %v154_v36 }
  0x55   :  { %2507 = vmatprep.subr.mxu0 %v3118_v5 }
  0x56   :  { %2508 = vmatpush3.msra.mxu0 %v153_v37 }
  0x57   :  { %2510 = vmatmul.mubr.msk.f32.vlgmr.msra.gmra.mxu0 %vm161_vm11, %v152_v38 }
 0x115   :  { %246 = sbr.rel (%p2263_p11) target bundleno = 1022 (0x3fe), region = 85 }
 0x117   :  { %v231_v39 = vpop.f32.mrf.mxu0 }
 0x118   :  { %v3414_v40 = vmax.f32 %v231_v39, 0.0 }
 0x119   :  { %v2511_v41 = vpop.f32.mrf.mxu0 }
 0x11a   :  { %v3122_v42 = vmov 0.0   ;;  %v248_v43 = vld [vmem:[#allocation2] sm:$0xf]  ;;  %v247_v44 = vld [vmem:[#allocation8] sm:$0xf]  ;;  %vm3123_vm12 = vmmov 0  }
 0x11b   :  { %2512 = vmatprep.subr.mxu0 %v3122_v42  ;;  %2531 = vmatprep.subr.mxu1 %v3122_v42  ;;  %v405_v58 = vld [vmem:[#allocation3] sm:$0xf]  ;;  %vm439_vm13 = vcmask 261120   ;;  %v444_v6 = vld [vmem:[#allocation10] sm:$0xf] }
 0x11c   :  { %2513 = vmatpush3.msra.mxu0 %v3362_v25  ;;  %2532 = vmatpush3.msra.mxu1 %v3322_v17  ;;  %v443_v29 = vld [vmem:[#allocation4] sm:$0xf] }
 0x11d   :  { %2514 = vmatprep.subr.mxu0 %v3122_v42  ;;  %2533 = vmatprep.subr.mxu1 %v3122_v42 }
 0x11e   :  { %2515 = vmatpush3.msra.mxu0 %v3357_v24  ;;  %2534 = vmatpush3.msra.mxu1 %v3317_v16 }
 0x11f   :  { %2516 = vmatprep.subr.mxu0 %v3122_v42  ;;  %2535 = vmatprep.subr.mxu1 %v3122_v42 }
 0x120   :  { %2517 = vmatpush3.msra.mxu0 %v3352_v23  ;;  %2536 = vmatpush3.msra.mxu1 %v3312_v15 }
 0x121   :  { %2518 = vmatprep.subr.mxu0 %v3122_v42  ;;  %2537 = vmatprep.subr.mxu1 %v3122_v42 }
 0x122   :  { %2519 = vmatpush3.msra.mxu0 %v3347_v22  ;;  %2538 = vmatpush3.msra.mxu1 %v3307_v14 }
 0x123   :  { %2520 = vmatprep.subr.mxu0 %v3122_v42  ;;  %2539 = vmatprep.subr.mxu1 %v3122_v42 }
 0x124   :  { %2521 = vmatpush3.msra.mxu0 %v3342_v21  ;;  %2540 = vmatpush3.msra.mxu1 %v3302_v13 }
 0x125   :  { %2522 = vmatprep.subr.mxu0 %v3122_v42  ;;  %2541 = vmatprep.subr.mxu1 %v3122_v42 }
 0x126   :  { %2523 = vmatpush3.msra.mxu0 %v3337_v20  ;;  %2542 = vmatpush3.msra.mxu1 %v3297_v12 }
 0x127   :  { %2524 = vmatprep.subr.mxu0 %v3122_v42  ;;  %2543 = vmatprep.subr.mxu1 %v3122_v42 }
 0x128   :  { %2525 = vmatpush3.msra.mxu0 %v3332_v19  ;;  %2544 = vmatpush3.msra.mxu1 %v3292_v11 }
 0x129   :  { %2526 = vmatprep.subr.mxu0 %v3122_v42  ;;  %2545 = vmatprep.subr.mxu1 %v3122_v42 }
 0x12a   :  { %2527 = vmatpush3.msra.mxu0 %v3327_v18  ;;  %2528 = vmatprep.mubr.msk.f32.mxu0 %vm3123_vm12, %v3122_v42 }
 0x12b   :  { %2546 = vmatpush3.msra.mxu1 %v3287_v10  ;;  %2547 = vmatprep.mubr.msk.f32.mxu1 %vm3123_vm12, %v3122_v42 }
 0x12c   :  { %2529 = vmatmul.mubr.msk.f32.vlgmr.msra.gmra.mxu0 %vm161_vm11, %v248_v43  ;;  %2548 = vmatmul.mubr.msk.f32.vlgmr.msra.gmra.mxu1 %vm161_vm11, %v247_v44 }
 0x1ec   :  { %v318_v45 = vpop.f32.mrf.mxu0  ;;  %v391_v46 = vpop.f32.mrf.mxu1 }
 0x1ed   :  { %v392_v47 = vadd.f32 %v391_v46, %v318_v45 }
 0x1ee   :  { %v2530_v48 = vpop.f32.mrf.mxu0  ;;  %v2549_v49 = vpop.f32.mrf.mxu1 }
 0x1ef   :  { %v395_v50 = vadd.f32 %v392_v47, %v3367_v26 }
 0x1f1   :  { %v396_v51 = vmul.f32 %v395_v50, %v3275_v7 }
 0x1f3   :  { %v2266_v52 = vmul.f32 -1.442695, %v396_v51 }
 0x1f5   :  { %2954 = vpow2.f32 %v2266_v52 }
 0x202   :  { %v2955_v53 = vpop.eup %2954 }
 0x203   :  { %v400_v54 = vadd.f32 1.0, %v2955_v53 }
 0x205   :  { %2956 = vrcp.f32 %v400_v54 }
 0x212   :  { %v2957_v55 = vpop.eup %2956 }
 0x213   :  { %v403_v56 = vmul.f32 %v2957_v55, %v3275_v7 }
 0x215   :  { %v404_v57 = vadd.f32 %v403_v56, %v3278_v8 }
 0x217   :  { %412 = vrot.lane.b32.xlu0 %v404_v57, %s3124_s9 }
 0x21b   :  { %407 = vrot.lane.b32.xlu0 %v405_v58, %s3125_s2 }
 0x289   :  { %v413_v59 = vpop.permute.xlu0 %412 }
 0x28a   :  { %v415_v60 = vmul.f32 %v413_v59, %v404_v57 }
 0x28c   :  { %417 = vrot.lane.b32.xlu1 %v415_v60, %s3125_s2 }
 0x28d   :  { %v408_v61 = vpop.permute.xlu0 %407 }
 0x28e   :  { %v410_v62 = vmul.f32 %v408_v61, %v404_v57 }
 0x2fe   :  { %v418_v63 = vpop.permute.xlu1 %417 }
 0x2ff   :  { %v420_v0 = vadd.f32 %v418_v63, %v410_v62 }
 0x301   :  { %2958 = vtanh.f32 %v420_v0 }
 0x30e   :  { %v2959_v1 = vpop.eup %2958 }
 0x30f   :  { %423 = vrot.lane.b32.xlu1 %v2959_v1, %s3124_s9 }
 0x381   :  { %v424_v2 = vpop.permute.xlu1 %423 }
 0x382   :  { %v426_v3 = vmul.f32 %v424_v2, %v404_v57 }
 0x384   :  { %436 = vrot.lane.b32.xlu1 %v426_v3, %s3124_s9  ;;  %433 = vrot.lane.b32.xlu0 %v426_v3, %s3125_s2 }
 0x388   :  { %428 = vrot.lane.b32.xlu0 %v420_v0, %s3126_s24 }
 0x3f6   :  { %v437_v4 = vpop.permute.xlu1 %436  ;;  %v434_v9 = vpop.permute.xlu0 %433 }
 0x3f7   :  { %v440_v27 = vsel %vm439_vm13, %v434_v9, %v437_v4  ;;  %v445_v28 = vmul.f32 %v434_v9, %v3414_v40 }
 0x3f8   :  { %v441_v31 = vmul.f32 %v440_v27, %v3383_v30 }
 0x3f9   :  { %v446_v32 = vmul.f32 %v445_v28, %v444_v6 }
 0x3fa   :  { %442 = vst.msk [vmem:[#allocation2] sm:$0xf] %vm237_vm8, %v441_v31  ;;  %v429_v33 = vpop.permute.xlu0 %428 }
 0x3fb   :  { %v447_v34 = vmax.f32 %v443_v29, %v446_v32  ;;  %431 = vst.msk [vmem:[#allocation3] sm:$0xf] %vm240_vm0, %v429_v33 }
 0x3fd   :  { %448 = vst.msk [vmem:[#allocation4] sm:$0xf] %vm240_vm0, %v447_v34 }
 0x3fe PF:  { %s3813_s15 = sld [smem:[#allocation19_spill]] }
 0x404   :  { %p2267_p12 = scmp.le.s32.totalorder %s3813_s15, 1 }
 0x405   :  { %s3129_s11 = smov (!%p2267_p12), 64   ;;  %s3130_s26 = smov (!%p2267_p12), 32  }
 0x406   :  { %452 = sbr.rel (%p2267_p12) target bundleno = 1775 (0x6ef), region = 89  ;;  %s3131_s7 = smov (!%p2267_p12), 96  }
 0x40b   :  { %v3127_v35 = vmov 0.0   ;;  %v455_v36 = vld [vmem:[#allocation2] sm:$0xf]  ;;  %v454_v37 = vld [vmem:[#allocation8 + $0x4] sm:$0xf]  ;;  %vm3128_vm14 = vmmov 0  }
 0x40c   :  { %2550 = vmatprep.subr.mxu0 %v3127_v35  ;;  %2569 = vmatprep.subr.mxu1 %v3127_v35  ;;  %v612_v52 = vld [vmem:[#allocation3] sm:$0xf]  ;;  %vm646_vm15 = vcmask 261120   ;;  %v652_v63 = vld [vmem:[#allocation10 + $0x4] sm:$0xf] }
 0x40d   :  { %2551 = vmatpush3.msra.mxu0 %v3362_v25  ;;  %2570 = vmatpush3.msra.mxu1 %v3322_v17  ;;  %v650_v3 = vld [vmem:[#allocation4] sm:$0xf] }
 0x40e   :  { %2552 = vmatprep.subr.mxu0 %v3127_v35  ;;  %2571 = vmatprep.subr.mxu1 %v3127_v35 }
 0x40f   :  { %2553 = vmatpush3.msra.mxu0 %v3357_v24  ;;  %2572 = vmatpush3.msra.mxu1 %v3317_v16 }
 0x410   :  { %2554 = vmatprep.subr.mxu0 %v3127_v35  ;;  %2573 = vmatprep.subr.mxu1 %v3127_v35 }
 0x411   :  { %2555 = vmatpush3.msra.mxu0 %v3352_v23  ;;  %2574 = vmatpush3.msra.mxu1 %v3312_v15 }
 0x412   :  { %2556 = vmatprep.subr.mxu0 %v3127_v35  ;;  %2575 = vmatprep.subr.mxu1 %v3127_v35 }
 0x413   :  { %2557 = vmatpush3.msra.mxu0 %v3347_v22  ;;  %2576 = vmatpush3.msra.mxu1 %v3307_v14 }
 0x414   :  { %2558 = vmatprep.subr.mxu0 %v3127_v35  ;;  %2577 = vmatprep.subr.mxu1 %v3127_v35 }
 0x415   :  { %2559 = vmatpush3.msra.mxu0 %v3342_v21  ;;  %2578 = vmatpush3.msra.mxu1 %v3302_v13 }
 0x416   :  { %2560 = vmatprep.subr.mxu0 %v3127_v35  ;;  %2579 = vmatprep.subr.mxu1 %v3127_v35 }
 0x417   :  { %2561 = vmatpush3.msra.mxu0 %v3337_v20  ;;  %2580 = vmatpush3.msra.mxu1 %v3297_v12 }
 0x418   :  { %2562 = vmatprep.subr.mxu0 %v3127_v35  ;;  %2581 = vmatprep.subr.mxu1 %v3127_v35 }
 0x419   :  { %2563 = vmatpush3.msra.mxu0 %v3332_v19  ;;  %2582 = vmatpush3.msra.mxu1 %v3292_v11 }
 0x41a   :  { %2564 = vmatprep.subr.mxu0 %v3127_v35  ;;  %2583 = vmatprep.subr.mxu1 %v3127_v35 }
 0x41b   :  { %2565 = vmatpush3.msra.mxu0 %v3327_v18  ;;  %2566 = vmatprep.mubr.msk.f32.mxu0 %vm3128_vm14, %v3127_v35 }
 0x41c   :  { %2584 = vmatpush3.msra.mxu1 %v3287_v10  ;;  %2585 = vmatprep.mubr.msk.f32.mxu1 %vm3128_vm14, %v3127_v35 }
 0x41d   :  { %2567 = vmatmul.mubr.msk.f32.vlgmr.msra.gmra.mxu0 %vm161_vm11, %v455_v36  ;;  %2586 = vmatmul.mubr.msk.f32.vlgmr.msra.gmra.mxu1 %vm161_vm11, %v454_v37 }
 0x4dd   :  { %v525_v38 = vpop.f32.mrf.mxu0  ;;  %v598_v39 = vpop.f32.mrf.mxu1 }
 0x4de   :  { %v599_v41 = vadd.f32 %v598_v39, %v525_v38 }
 0x4df   :  { %v2568_v42 = vpop.f32.mrf.mxu0  ;;  %v2587_v43 = vpop.f32.mrf.mxu1 }
 0x4e0   :  { %v602_v44 = vadd.f32 %v599_v41, %v3367_v26 }
 0x4e2   :  { %v603_v45 = vmul.f32 %v602_v44, %v3275_v7 }
 0x4e4   :  { %v2270_v46 = vmul.f32 -1.442695, %v603_v45 }
 0x4e6   :  { %2960 = vpow2.f32 %v2270_v46 }
 0x4f3   :  { %v2961_v47 = vpop.eup %2960 }
 0x4f4   :  { %v607_v48 = vadd.f32 1.0, %v2961_v47 }
 0x4f6   :  { %2962 = vrcp.f32 %v607_v48 }
 0x503   :  { %v2963_v49 = vpop.eup %2962 }
 0x504   :  { %v610_v50 = vmul.f32 %v2963_v49, %v3275_v7 }
 0x506   :  { %v611_v51 = vadd.f32 %v610_v50, %v3278_v8 }
 0x508   :  { %619 = vrot.lane.b32.xlu0 %v611_v51, %s3129_s11 }
 0x50c   :  { %614 = vrot.lane.b32.xlu0 %v612_v52, %s3130_s26 }
 0x57a   :  { %v620_v53 = vpop.permute.xlu0 %619 }
 0x57b   :  { %v622_v54 = vmul.f32 %v620_v53, %v611_v51 }
 0x57d   :  { %624 = vrot.lane.b32.xlu1 %v622_v54, %s3130_s26 }
 0x57e   :  { %v615_v55 = vpop.permute.xlu0 %614 }
 0x57f   :  { %v617_v56 = vmul.f32 %v615_v55, %v611_v51 }
 0x5ef   :  { %v625_v57 = vpop.permute.xlu1 %624 }
 0x5f0   :  { %v627_v58 = vadd.f32 %v625_v57, %v617_v56 }
 0x5f2   :  { %2964 = vtanh.f32 %v627_v58 }
 0x5ff   :  { %v2965_v59 = vpop.eup %2964 }
 0x600   :  { %630 = vrot.lane.b32.xlu1 %v2965_v59, %s3129_s11 }
 0x672   :  { %v631_v60 = vpop.permute.xlu1 %630 }
 0x673   :  { %v633_v61 = vmul.f32 %v631_v60, %v611_v51 }
 0x675   :  { %643 = vrot.lane.b32.xlu1 %v633_v61, %s3129_s11  ;;  %640 = vrot.lane.b32.xlu0 %v633_v61, %s3130_s26 }
 0x679   :  { %635 = vrot.lane.b32.xlu0 %v627_v58, %s3131_s7 }
 0x6e7   :  { %v644_v62 = vpop.permute.xlu1 %643  ;;  %v641_v0 = vpop.permute.xlu0 %640 }
 0x6e8   :  { %v647_v1 = vsel %vm646_vm15, %v641_v0, %v644_v62  ;;  %v653_v2 = vmul.f32 %v641_v0, %v3414_v40 }
 0x6e9   :  { %v648_v4 = vmul.f32 %v647_v1, %v3383_v30 }
 0x6ea   :  { %v654_v6 = vmul.f32 %v653_v2, %v652_v63 }
 0x6eb   :  { %649 = vst.msk [vmem:[#allocation2] sm:$0xf] %vm237_vm8, %v648_v4  ;;  %v636_v9 = vpop.permute.xlu0 %635 }
 0x6ec   :  { %v655_v27 = vmax.f32 %v650_v3, %v654_v6  ;;  %638 = vst.msk [vmem:[#allocation3] sm:$0xf] %vm240_vm0, %v636_v9 }
 0x6ee   :  { %656 = vst.msk [vmem:[#allocation4] sm:$0xf] %vm240_vm0, %v655_v27 }
 0x6ef PF:  { %s3814_s8 = sld [smem:[#allocation19_spill]] }
 0x6f5   :  { %p2271_p13 = scmp.le.s32.totalorder %s3814_s8, 2 }
 0x6f6   :  { %s3134_s5 = smov (!%p2271_p13), 64   ;;  %s3135_s0 = smov (!%p2271_p13), 32  }
 0x6f7   :  { %660 = sbr.rel (%p2271_p13) target bundleno = 2528 (0x9e0), region = 93  ;;  %s3136_s19 = smov (!%p2271_p13), 96  }
 0x6fc   :  { %v3132_v28 = vmov 0.0   ;;  %v663_v29 = vld [vmem:[#allocation2] sm:$0xf]  ;;  %v662_v31 = vld [vmem:[#allocation8 + $0x8] sm:$0xf]  ;;  %vm3133_vm2 = vmmov 0  }
 0x6fd   :  { %2588 = vmatprep.subr.mxu0 %v3132_v28  ;;  %2607 = vmatprep.subr.mxu1 %v3132_v28  ;;  %v820_v46 = vld [vmem:[#allocation3] sm:$0xf]  ;;  %vm854_vm3 = vcmask 261120   ;;  %v860_v57 = vld [vmem:[#allocation10 + $0x8] sm:$0xf] }
 0x6fe   :  { %2589 = vmatpush3.msra.mxu0 %v3362_v25  ;;  %2608 = vmatpush3.msra.mxu1 %v3322_v17  ;;  %v858_v61 = vld [vmem:[#allocation4] sm:$0xf] }
 0x6ff   :  { %2590 = vmatprep.subr.mxu0 %v3132_v28  ;;  %2609 = vmatprep.subr.mxu1 %v3132_v28 }
 0x700   :  { %2591 = vmatpush3.msra.mxu0 %v3357_v24  ;;  %2610 = vmatpush3.msra.mxu1 %v3317_v16 }
 0x701   :  { %2592 = vmatprep.subr.mxu0 %v3132_v28  ;;  %2611 = vmatprep.subr.mxu1 %v3132_v28 }
 0x702   :  { %2593 = vmatpush3.msra.mxu0 %v3352_v23  ;;  %2612 = vmatpush3.msra.mxu1 %v3312_v15 }
 0x703   :  { %2594 = vmatprep.subr.mxu0 %v3132_v28  ;;  %2613 = vmatprep.subr.mxu1 %v3132_v28 }
 0x704   :  { %2595 = vmatpush3.msra.mxu0 %v3347_v22  ;;  %2614 = vmatpush3.msra.mxu1 %v3307_v14 }
 0x705   :  { %2596 = vmatprep.subr.mxu0 %v3132_v28  ;;  %2615 = vmatprep.subr.mxu1 %v3132_v28 }
 0x706   :  { %2597 = vmatpush3.msra.mxu0 %v3342_v21  ;;  %2616 = vmatpush3.msra.mxu1 %v3302_v13 }
 0x707   :  { %2598 = vmatprep.subr.mxu0 %v3132_v28  ;;  %2617 = vmatprep.subr.mxu1 %v3132_v28 }
 0x708   :  { %2599 = vmatpush3.msra.mxu0 %v3337_v20  ;;  %2618 = vmatpush3.msra.mxu1 %v3297_v12 }
 0x709   :  { %2600 = vmatprep.subr.mxu0 %v3132_v28  ;;  %2619 = vmatprep.subr.mxu1 %v3132_v28 }
 0x70a   :  { %2601 = vmatpush3.msra.mxu0 %v3332_v19  ;;  %2620 = vmatpush3.msra.mxu1 %v3292_v11 }
 0x70b   :  { %2602 = vmatprep.subr.mxu0 %v3132_v28  ;;  %2621 = vmatprep.subr.mxu1 %v3132_v28 }
 0x70c   :  { %2603 = vmatpush3.msra.mxu0 %v3327_v18  ;;  %2604 = vmatprep.mubr.msk.f32.mxu0 %vm3133_vm2, %v3132_v28 }
 0x70d   :  { %2622 = vmatpush3.msra.mxu1 %v3287_v10  ;;  %2623 = vmatprep.mubr.msk.f32.mxu1 %vm3133_vm2, %v3132_v28 }
 0x70e   :  { %2605 = vmatmul.mubr.msk.f32.vlgmr.msra.gmra.mxu0 %vm161_vm11, %v663_v29  ;;  %2624 = vmatmul.mubr.msk.f32.vlgmr.msra.gmra.mxu1 %vm161_vm11, %v662_v31 }
 0x7ce   :  { %v733_v32 = vpop.f32.mrf.mxu0  ;;  %v806_v33 = vpop.f32.mrf.mxu1 }
 0x7cf   :  { %v807_v34 = vadd.f32 %v806_v33, %v733_v32 }
 0x7d0   :  { %v2606_v35 = vpop.f32.mrf.mxu0  ;;  %v2625_v36 = vpop.f32.mrf.mxu1 }
 0x7d1   :  { %v810_v37 = vadd.f32 %v807_v34, %v3367_v26 }
 0x7d3   :  { %v811_v38 = vmul.f32 %v810_v37, %v3275_v7 }
 0x7d5   :  { %v2274_v39 = vmul.f32 -1.442695, %v811_v38 }
 0x7d7   :  { %2966 = vpow2.f32 %v2274_v39 }
 0x7e4   :  { %v2967_v41 = vpop.eup %2966 }
 0x7e5   :  { %v815_v42 = vadd.f32 1.0, %v2967_v41 }
 0x7e7   :  { %2968 = vrcp.f32 %v815_v42 }
 0x7f4   :  { %v2969_v43 = vpop.eup %2968 }
 0x7f5   :  { %v818_v44 = vmul.f32 %v2969_v43, %v3275_v7 }
 0x7f7   :  { %v819_v45 = vadd.f32 %v818_v44, %v3278_v8 }
 0x7f9   :  { %827 = vrot.lane.b32.xlu0 %v819_v45, %s3134_s5 }
 0x7fd   :  { %822 = vrot.lane.b32.xlu0 %v820_v46, %s3135_s0 }
 0x86b   :  { %v828_v47 = vpop.permute.xlu0 %827 }
 0x86c   :  { %v830_v48 = vmul.f32 %v828_v47, %v819_v45 }
 0x86e   :  { %832 = vrot.lane.b32.xlu1 %v830_v48, %s3135_s0 }
 0x86f   :  { %v823_v49 = vpop.permute.xlu0 %822 }
 0x870   :  { %v825_v50 = vmul.f32 %v823_v49, %v819_v45 }
 0x8e0   :  { %v833_v51 = vpop.permute.xlu1 %832 }
 0x8e1   :  { %v835_v52 = vadd.f32 %v833_v51, %v825_v50 }
 0x8e3   :  { %2970 = vtanh.f32 %v835_v52 }
 0x8f0   :  { %v2971_v53 = vpop.eup %2970 }
 0x8f1   :  { %838 = vrot.lane.b32.xlu1 %v2971_v53, %s3134_s5 }
 0x963   :  { %v839_v54 = vpop.permute.xlu1 %838 }
 0x964   :  { %v841_v55 = vmul.f32 %v839_v54, %v819_v45 }
 0x966   :  { %851 = vrot.lane.b32.xlu1 %v841_v55, %s3134_s5  ;;  %848 = vrot.lane.b32.xlu0 %v841_v55, %s3135_s0 }
 0x96a   :  { %843 = vrot.lane.b32.xlu0 %v835_v52, %s3136_s19 }
 0x9d8   :  { %v852_v56 = vpop.permute.xlu1 %851  ;;  %v849_v58 = vpop.permute.xlu0 %848 }
 0x9d9   :  { %v855_v59 = vsel %vm854_vm3, %v849_v58, %v852_v56  ;;  %v861_v60 = vmul.f32 %v849_v58, %v3414_v40 }
 0x9da   :  { %v856_v62 = vmul.f32 %v855_v59, %v3383_v30 }
 0x9db   :  { %v862_v63 = vmul.f32 %v861_v60, %v860_v57 }
 0x9dc   :  { %857 = vst.msk [vmem:[#allocation2] sm:$0xf] %vm237_vm8, %v856_v62  ;;  %v844_v0 = vpop.permute.xlu0 %843 }
 0x9dd   :  { %v863_v1 = vmax.f32 %v858_v61, %v862_v63  ;;  %846 = vst.msk [vmem:[#allocation3] sm:$0xf] %vm240_vm0, %v844_v0 }
 0x9df   :  { %864 = vst.msk [vmem:[#allocation4] sm:$0xf] %vm240_vm0, %v863_v1 }
 0x9e0 PF:  { %s3815_s3 = sld [smem:[#allocation19_spill]] }
 0x9e6   :  { %p2275_p0 = scmp.le.s32.totalorder %s3815_s3, 3 }
 0x9e7   :  { %s3139_s12 = smov (!%p2275_p0), 64   ;;  %s3140_s29 = smov (!%p2275_p0), 32  }
 0x9e8   :  { %868 = sbr.rel (%p2275_p0) target bundleno = 3281 (0xcd1), region = 97  ;;  %s3141_s6 = smov (!%p2275_p0), 96  }
 0x9ed   :  { %v3137_v2 = vmov 0.0   ;;  %v871_v3 = vld [vmem:[#allocation2] sm:$0xf]  ;;  %v870_v4 = vld [vmem:[#allocation8 + $0xc] sm:$0xf]  ;;  %vm3138_vm4 = vmmov 0  }
 0x9ee   :  { %2626 = vmatprep.subr.mxu0 %v3137_v2  ;;  %2645 = vmatprep.subr.mxu1 %v3137_v2  ;;  %v1028_v39 = vld [vmem:[#allocation3] sm:$0xf]  ;;  %vm1062_vm5 = vcmask 261120   ;;  %v1068_v51 = vld [vmem:[#allocation10 + $0xc] sm:$0xf] }
 0x9ef   :  { %2627 = vmatpush3.msra.mxu0 %v3362_v25  ;;  %2646 = vmatpush3.msra.mxu1 %v3322_v17  ;;  %v1066_v55 = vld [vmem:[#allocation4] sm:$0xf] }
 0x9f0   :  { %2628 = vmatprep.subr.mxu0 %v3137_v2  ;;  %2647 = vmatprep.subr.mxu1 %v3137_v2 }
 0x9f1   :  { %2629 = vmatpush3.msra.mxu0 %v3357_v24  ;;  %2648 = vmatpush3.msra.mxu1 %v3317_v16 }
 0x9f2   :  { %2630 = vmatprep.subr.mxu0 %v3137_v2  ;;  %2649 = vmatprep.subr.mxu1 %v3137_v2 }
 0x9f3   :  { %2631 = vmatpush3.msra.mxu0 %v3352_v23  ;;  %2650 = vmatpush3.msra.mxu1 %v3312_v15 }
 0x9f4   :  { %2632 = vmatprep.subr.mxu0 %v3137_v2  ;;  %2651 = vmatprep.subr.mxu1 %v3137_v2 }
 0x9f5   :  { %2633 = vmatpush3.msra.mxu0 %v3347_v22  ;;  %2652 = vmatpush3.msra.mxu1 %v3307_v14 }
 0x9f6   :  { %2634 = vmatprep.subr.mxu0 %v3137_v2  ;;  %2653 = vmatprep.subr.mxu1 %v3137_v2 }
 0x9f7   :  { %2635 = vmatpush3.msra.mxu0 %v3342_v21  ;;  %2654 = vmatpush3.msra.mxu1 %v3302_v13 }
 0x9f8   :  { %2636 = vmatprep.subr.mxu0 %v3137_v2  ;;  %2655 = vmatprep.subr.mxu1 %v3137_v2 }
 0x9f9   :  { %2637 = vmatpush3.msra.mxu0 %v3337_v20  ;;  %2656 = vmatpush3.msra.mxu1 %v3297_v12 }
 0x9fa   :  { %2638 = vmatprep.subr.mxu0 %v3137_v2  ;;  %2657 = vmatprep.subr.mxu1 %v3137_v2 }
 0x9fb   :  { %2639 = vmatpush3.msra.mxu0 %v3332_v19  ;;  %2658 = vmatpush3.msra.mxu1 %v3292_v11 }
 0x9fc   :  { %2640 = vmatprep.subr.mxu0 %v3137_v2  ;;  %2659 = vmatprep.subr.mxu1 %v3137_v2 }
 0x9fd   :  { %2641 = vmatpush3.msra.mxu0 %v3327_v18  ;;  %2642 = vmatprep.mubr.msk.f32.mxu0 %vm3138_vm4, %v3137_v2 }
 0x9fe   :  { %2660 = vmatpush3.msra.mxu1 %v3287_v10  ;;  %2661 = vmatprep.mubr.msk.f32.mxu1 %vm3138_vm4, %v3137_v2 }
 0x9ff   :  { %2643 = vmatmul.mubr.msk.f32.vlgmr.msra.gmra.mxu0 %vm161_vm11, %v871_v3  ;;  %2662 = vmatmul.mubr.msk.f32.vlgmr.msra.gmra.mxu1 %vm161_vm11, %v870_v4 }
 0xabf   :  { %v941_v6 = vpop.f32.mrf.mxu0  ;;  %v1014_v9 = vpop.f32.mrf.mxu1 }
 0xac0   :  { %v1015_v27 = vadd.f32 %v1014_v9, %v941_v6 }
 0xac1   :  { %v2644_v28 = vpop.f32.mrf.mxu0  ;;  %v2663_v29 = vpop.f32.mrf.mxu1 }
 0xac2   :  { %v1018_v31 = vadd.f32 %v1015_v27, %v3367_v26 }
 0xac4   :  { %v1019_v32 = vmul.f32 %v1018_v31, %v3275_v7 }
 0xac6   :  { %v2278_v33 = vmul.f32 -1.442695, %v1019_v32 }
 0xac8   :  { %2972 = vpow2.f32 %v2278_v33 }
 0xad5   :  { %v2973_v34 = vpop.eup %2972 }
 0xad6   :  { %v1023_v35 = vadd.f32 1.0, %v2973_v34 }
 0xad8   :  { %2974 = vrcp.f32 %v1023_v35 }
 0xae5   :  { %v2975_v36 = vpop.eup %2974 }
 0xae6   :  { %v1026_v37 = vmul.f32 %v2975_v36, %v3275_v7 }
 0xae8   :  { %v1027_v38 = vadd.f32 %v1026_v37, %v3278_v8 }
 0xaea   :  { %1035 = vrot.lane.b32.xlu0 %v1027_v38, %s3139_s12 }
 0xaee   :  { %1030 = vrot.lane.b32.xlu0 %v1028_v39, %s3140_s29 }
 0xb5c   :  { %v1036_v41 = vpop.permute.xlu0 %1035 }
 0xb5d   :  { %v1038_v42 = vmul.f32 %v1036_v41, %v1027_v38 }
 0xb5f   :  { %1040 = vrot.lane.b32.xlu1 %v1038_v42, %s3140_s29 }
 0xb60   :  { %v1031_v43 = vpop.permute.xlu0 %1030 }
 0xb61   :  { %v1033_v44 = vmul.f32 %v1031_v43, %v1027_v38 }
 0xbd1   :  { %v1041_v45 = vpop.permute.xlu1 %1040 }
 0xbd2   :  { %v1043_v46 = vadd.f32 %v1041_v45, %v1033_v44 }
 0xbd4   :  { %2976 = vtanh.f32 %v1043_v46 }
 0xbe1   :  { %v2977_v47 = vpop.eup %2976 }
 0xbe2   :  { %1046 = vrot.lane.b32.xlu1 %v2977_v47, %s3139_s12 }
 0xc54   :  { %v1047_v48 = vpop.permute.xlu1 %1046 }
 0xc55   :  { %v1049_v49 = vmul.f32 %v1047_v48, %v1027_v38 }
 0xc57   :  { %1059 = vrot.lane.b32.xlu1 %v1049_v49, %s3139_s12  ;;  %1056 = vrot.lane.b32.xlu0 %v1049_v49, %s3140_s29 }
 0xc5b   :  { %1051 = vrot.lane.b32.xlu0 %v1043_v46, %s3141_s6 }
 0xcc9   :  { %v1060_v50 = vpop.permute.xlu1 %1059  ;;  %v1057_v52 = vpop.permute.xlu0 %1056 }
 0xcca   :  { %v1063_v53 = vsel %vm1062_vm5, %v1057_v52, %v1060_v50  ;;  %v1069_v54 = vmul.f32 %v1057_v52, %v3414_v40 }
 0xccb   :  { %v1064_v56 = vmul.f32 %v1063_v53, %v3383_v30 }
 0xccc   :  { %v1070_v57 = vmul.f32 %v1069_v54, %v1068_v51 }
 0xccd   :  { %1065 = vst.msk [vmem:[#allocation2] sm:$0xf] %vm237_vm8, %v1064_v56  ;;  %v1052_v58 = vpop.permute.xlu0 %1051 }
 0xcce   :  { %v1071_v59 = vmax.f32 %v1066_v55, %v1070_v57  ;;  %1054 = vst.msk [vmem:[#allocation3] sm:$0xf] %vm240_vm0, %v1052_v58 }
 0xcd0   :  { %1072 = vst.msk [vmem:[#allocation4] sm:$0xf] %vm240_vm0, %v1071_v59 }
 0xcd1 PF:  { %s3816_s20 = sld [smem:[#allocation19_spill]] }
 0xcd7   :  { %p2279_p1 = scmp.le.s32.totalorder %s3816_s20, 4 }
 0xcd8   :  { %s3144_s21 = smov (!%p2279_p1), 64   ;;  %s3145_s22 = smov (!%p2279_p1), 32  }
 0xcd9   :  { %1076 = sbr.rel (%p2279_p1) target bundleno = 4034 (0xfc2), region = 101  ;;  %s3146_s23 = smov (!%p2279_p1), 96  }
 0xcde   :  { %v3142_v60 = vmov 0.0   ;;  %v1079_v61 = vld [vmem:[#allocation2] sm:$0xf]  ;;  %vm3143_vm6 = vmmov 0   ;;  %v1236_v33 = vld [vmem:[#allocation3] sm:$0xf] }
 0xcdf   :  { %2664 = vmatprep.subr.mxu0 %v3142_v60  ;;  %2683 = vmatprep.subr.mxu1 %v3142_v60  ;;  %v1078_v62 = vld [vmem:[#allocation8 + $0x10] sm:$0xf]  ;;  %vm1270_vm7 = vcmask 261120   ;;  %v1274_v49 = vld [vmem:[#allocation4] sm:$0xf] }
 0xce0   :  { %2665 = vmatpush3.msra.mxu0 %v3362_v25  ;;  %2684 = vmatpush3.msra.mxu1 %v3322_v17  ;;  %v1276_v45 = vld [vmem:[#allocation10 + $0x10] sm:$0xf] }
 0xce1   :  { %2666 = vmatprep.subr.mxu0 %v3142_v60  ;;  %2685 = vmatprep.subr.mxu1 %v3142_v60 }
 0xce2   :  { %2667 = vmatpush3.msra.mxu0 %v3357_v24  ;;  %2686 = vmatpush3.msra.mxu1 %v3317_v16 }
 0xce3   :  { %2668 = vmatprep.subr.mxu0 %v3142_v60  ;;  %2687 = vmatprep.subr.mxu1 %v3142_v60 }
 0xce4   :  { %2669 = vmatpush3.msra.mxu0 %v3352_v23  ;;  %2688 = vmatpush3.msra.mxu1 %v3312_v15 }
 0xce5   :  { %2670 = vmatprep.subr.mxu0 %v3142_v60  ;;  %2689 = vmatprep.subr.mxu1 %v3142_v60 }
 0xce6   :  { %2671 = vmatpush3.msra.mxu0 %v3347_v22  ;;  %2690 = vmatpush3.msra.mxu1 %v3307_v14 }
 0xce7   :  { %2672 = vmatprep.subr.mxu0 %v3142_v60  ;;  %2691 = vmatprep.subr.mxu1 %v3142_v60 }
 0xce8   :  { %2673 = vmatpush3.msra.mxu0 %v3342_v21  ;;  %2692 = vmatpush3.msra.mxu1 %v3302_v13 }
 0xce9   :  { %2674 = vmatprep.subr.mxu0 %v3142_v60  ;;  %2693 = vmatprep.subr.mxu1 %v3142_v60 }
 0xcea   :  { %2675 = vmatpush3.msra.mxu0 %v3337_v20  ;;  %2694 = vmatpush3.msra.mxu1 %v3297_v12 }
 0xceb   :  { %2676 = vmatprep.subr.mxu0 %v3142_v60  ;;  %2695 = vmatprep.subr.mxu1 %v3142_v60 }
 0xcec   :  { %2677 = vmatpush3.msra.mxu0 %v3332_v19  ;;  %2696 = vmatpush3.msra.mxu1 %v3292_v11 }
 0xced   :  { %2678 = vmatprep.subr.mxu0 %v3142_v60  ;;  %2697 = vmatprep.subr.mxu1 %v3142_v60 }
 0xcee   :  { %2679 = vmatpush3.msra.mxu0 %v3327_v18  ;;  %2680 = vmatprep.mubr.msk.f32.mxu0 %vm3143_vm6, %v3142_v60 }
 0xcef   :  { %2698 = vmatpush3.msra.mxu1 %v3287_v10  ;;  %2699 = vmatprep.mubr.msk.f32.mxu1 %vm3143_vm6, %v3142_v60 }
 0xcf0   :  { %2681 = vmatmul.mubr.msk.f32.vlgmr.msra.gmra.mxu0 %vm161_vm11, %v1079_v61  ;;  %2700 = vmatmul.mubr.msk.f32.vlgmr.msra.gmra.mxu1 %vm161_vm11, %v1078_v62 }
 0xdb0   :  { %v1149_v63 = vpop.f32.mrf.mxu0  ;;  %v1222_v0 = vpop.f32.mrf.mxu1 }
 0xdb1   :  { %v1223_v1 = vadd.f32 %v1222_v0, %v1149_v63 }
 0xdb2   :  { %v2682_v2 = vpop.f32.mrf.mxu0  ;;  %v2701_v3 = vpop.f32.mrf.mxu1 }
 0xdb3   :  { %v1226_v4 = vadd.f32 %v1223_v1, %v3367_v26 }
 0xdb5   :  { %v1227_v6 = vmul.f32 %v1226_v4, %v3275_v7 }
 0xdb7   :  { %v2282_v9 = vmul.f32 -1.442695, %v1227_v6 }
 0xdb9   :  { %2978 = vpow2.f32 %v2282_v9 }
 0xdc6   :  { %v2979_v27 = vpop.eup %2978 }
 0xdc7   :  { %v1231_v28 = vadd.f32 1.0, %v2979_v27 }
 0xdc9   :  { %2980 = vrcp.f32 %v1231_v28 }
 0xdd6   :  { %v2981_v29 = vpop.eup %2980 }
 0xdd7   :  { %v1234_v31 = vmul.f32 %v2981_v29, %v3275_v7 }
 0xdd9   :  { %v1235_v32 = vadd.f32 %v1234_v31, %v3278_v8 }
 0xddb   :  { %1243 = vrot.lane.b32.xlu0 %v1235_v32, %s3144_s21 }
 0xddf   :  { %1238 = vrot.lane.b32.xlu0 %v1236_v33, %s3145_s22 }
 0xe4d   :  { %v1244_v34 = vpop.permute.xlu0 %1243 }
 0xe4e   :  { %v1246_v35 = vmul.f32 %v1244_v34, %v1235_v32 }
 0xe50   :  { %1248 = vrot.lane.b32.xlu1 %v1246_v35, %s3145_s22 }
 0xe51   :  { %v1239_v36 = vpop.permute.xlu0 %1238 }
 0xe52   :  { %v1241_v37 = vmul.f32 %v1239_v36, %v1235_v32 }
 0xec2   :  { %v1249_v38 = vpop.permute.xlu1 %1248 }
 0xec3   :  { %v1251_v39 = vadd.f32 %v1249_v38, %v1241_v37 }
 0xec5   :  { %2982 = vtanh.f32 %v1251_v39 }
 0xed2   :  { %v2983_v41 = vpop.eup %2982 }
 0xed3   :  { %1254 = vrot.lane.b32.xlu1 %v2983_v41, %s3144_s21 }
 0xf45   :  { %v1255_v42 = vpop.permute.xlu1 %1254 }
 0xf46   :  { %v1257_v43 = vmul.f32 %v1255_v42, %v1235_v32 }
 0xf48   :  { %1267 = vrot.lane.b32.xlu1 %v1257_v43, %s3144_s21  ;;  %1264 = vrot.lane.b32.xlu0 %v1257_v43, %s3145_s22 }
 0xf4c   :  { %1259 = vrot.lane.b32.xlu0 %v1251_v39, %s3146_s23 }
 0xfba   :  { %v1268_v44 = vpop.permute.xlu1 %1267  ;;  %v1265_v46 = vpop.permute.xlu0 %1264 }
 0xfbb   :  { %v1271_v47 = vsel %vm1270_vm7, %v1265_v46, %v1268_v44  ;;  %v1277_v48 = vmul.f32 %v1265_v46, %v3414_v40 }
 0xfbc   :  { %v1272_v50 = vmul.f32 %v1271_v47, %v3383_v30 }
 0xfbd   :  { %v1278_v51 = vmul.f32 %v1277_v48, %v1276_v45 }
 0xfbe   :  { %1273 = vst.msk [vmem:[#allocation2] sm:$0xf] %vm237_vm8, %v1272_v50  ;;  %v1260_v52 = vpop.permute.xlu0 %1259 }
 0xfbf   :  { %v1279_v53 = vmax.f32 %v1274_v49, %v1278_v51  ;;  %1262 = vst.msk [vmem:[#allocation3] sm:$0xf] %vm240_vm0, %v1260_v52 }
 0xfc1   :  { %1280 = vst.msk [vmem:[#allocation4] sm:$0xf] %vm240_vm0, %v1279_v53 }
 0xfc2 PF:  { %s3817_s24 = sld [smem:[#allocation19_spill]] }
 0xfc8   :  { %p2283_p2 = scmp.le.s32.totalorder %s3817_s24, 5 }
 0xfc9   :  { %s3149_s25 = smov (!%p2283_p2), 64   ;;  %s3150_s27 = smov (!%p2283_p2), 32  }
 0xfca   :  { %1284 = sbr.rel (%p2283_p2) target bundleno = 4787 (0x12b3), region = 105  ;;  %s3151_s15 = smov (!%p2283_p2), 96  }
 0xfcf   :  { %v3147_v54 = vmov 0.0   ;;  %v1287_v55 = vld [vmem:[#allocation2] sm:$0xf]  ;;  %vm3148_vm9 = vmmov 0   ;;  %v1444_v9 = vld [vmem:[#allocation3] sm:$0xf] }
 0xfd0   :  { %2702 = vmatprep.subr.mxu0 %v3147_v54  ;;  %2721 = vmatprep.subr.mxu1 %v3147_v54  ;;  %v1286_v56 = vld [vmem:[#allocation8 + $0x14] sm:$0xf]  ;;  %vm1478_vm10 = vcmask 261120   ;;  %v1482_v43 = vld [vmem:[#allocation4] sm:$0xf] }
 0xfd1   :  { %2703 = vmatpush3.msra.mxu0 %v3362_v25  ;;  %2722 = vmatpush3.msra.mxu1 %v3322_v17  ;;  %v1484_v38 = vld [vmem:[#allocation10 + $0x14] sm:$0xf] }
 0xfd2   :  { %2704 = vmatprep.subr.mxu0 %v3147_v54  ;;  %2723 = vmatprep.subr.mxu1 %v3147_v54 }
 0xfd3   :  { %2705 = vmatpush3.msra.mxu0 %v3357_v24  ;;  %2724 = vmatpush3.msra.mxu1 %v3317_v16 }
 0xfd4   :  { %2706 = vmatprep.subr.mxu0 %v3147_v54  ;;  %2725 = vmatprep.subr.mxu1 %v3147_v54 }
 0xfd5   :  { %2707 = vmatpush3.msra.mxu0 %v3352_v23  ;;  %2726 = vmatpush3.msra.mxu1 %v3312_v15 }
 0xfd6   :  { %2708 = vmatprep.subr.mxu0 %v3147_v54  ;;  %2727 = vmatprep.subr.mxu1 %v3147_v54 }
 0xfd7   :  { %2709 = vmatpush3.msra.mxu0 %v3347_v22  ;;  %2728 = vmatpush3.msra.mxu1 %v3307_v14 }
 0xfd8   :  { %2710 = vmatprep.subr.mxu0 %v3147_v54  ;;  %2729 = vmatprep.subr.mxu1 %v3147_v54 }
 0xfd9   :  { %2711 = vmatpush3.msra.mxu0 %v3342_v21  ;;  %2730 = vmatpush3.msra.mxu1 %v3302_v13 }
 0xfda   :  { %2712 = vmatprep.subr.mxu0 %v3147_v54  ;;  %2731 = vmatprep.subr.mxu1 %v3147_v54 }
 0xfdb   :  { %2713 = vmatpush3.msra.mxu0 %v3337_v20  ;;  %2732 = vmatpush3.msra.mxu1 %v3297_v12 }
 0xfdc   :  { %2714 = vmatprep.subr.mxu0 %v3147_v54  ;;  %2733 = vmatprep.subr.mxu1 %v3147_v54 }
 0xfdd   :  { %2715 = vmatpush3.msra.mxu0 %v3332_v19  ;;  %2734 = vmatpush3.msra.mxu1 %v3292_v11 }
 0xfde   :  { %2716 = vmatprep.subr.mxu0 %v3147_v54  ;;  %2735 = vmatprep.subr.mxu1 %v3147_v54 }
 0xfdf   :  { %2717 = vmatpush3.msra.mxu0 %v3327_v18  ;;  %2718 = vmatprep.mubr.msk.f32.mxu0 %vm3148_vm9, %v3147_v54 }
 0xfe0   :  { %2736 = vmatpush3.msra.mxu1 %v3287_v10  ;;  %2737 = vmatprep.mubr.msk.f32.mxu1 %vm3148_vm9, %v3147_v54 }
 0xfe1   :  { %2719 = vmatmul.mubr.msk.f32.vlgmr.msra.gmra.mxu0 %vm161_vm11, %v1287_v55  ;;  %2738 = vmatmul.mubr.msk.f32.vlgmr.msra.gmra.mxu1 %vm161_vm11, %v1286_v56 }
0x10a1   :  { %v1357_v57 = vpop.f32.mrf.mxu0  ;;  %v1430_v58 = vpop.f32.mrf.mxu1 }
0x10a2   :  { %v1431_v59 = vadd.f32 %v1430_v58, %v1357_v57 }
0x10a3   :  { %v2720_v60 = vpop.f32.mrf.mxu0  ;;  %v2739_v61 = vpop.f32.mrf.mxu1 }
0x10a4   :  { %v1434_v62 = vadd.f32 %v1431_v59, %v3367_v26 }
0x10a6   :  { %v1435_v63 = vmul.f32 %v1434_v62, %v3275_v7 }
0x10a8   :  { %v2286_v0 = vmul.f32 -1.442695, %v1435_v63 }
0x10aa   :  { %2984 = vpow2.f32 %v2286_v0 }
0x10b7   :  { %v2985_v1 = vpop.eup %2984 }
0x10b8   :  { %v1439_v2 = vadd.f32 1.0, %v2985_v1 }
0x10ba   :  { %2986 = vrcp.f32 %v1439_v2 }
0x10c7   :  { %v2987_v3 = vpop.eup %2986 }
0x10c8   :  { %v1442_v4 = vmul.f32 %v2987_v3, %v3275_v7 }
0x10ca   :  { %v1443_v6 = vadd.f32 %v1442_v4, %v3278_v8 }
0x10cc   :  { %1451 = vrot.lane.b32.xlu0 %v1443_v6, %s3149_s25 }
0x10d0   :  { %1446 = vrot.lane.b32.xlu0 %v1444_v9, %s3150_s27 }
0x113e   :  { %v1452_v27 = vpop.permute.xlu0 %1451 }
0x113f   :  { %v1454_v28 = vmul.f32 %v1452_v27, %v1443_v6 }
0x1141   :  { %1456 = vrot.lane.b32.xlu1 %v1454_v28, %s3150_s27 }
0x1142   :  { %v1447_v29 = vpop.permute.xlu0 %1446 }
0x1143   :  { %v1449_v31 = vmul.f32 %v1447_v29, %v1443_v6 }
0x11b3   :  { %v1457_v32 = vpop.permute.xlu1 %1456 }
0x11b4   :  { %v1459_v33 = vadd.f32 %v1457_v32, %v1449_v31 }
0x11b6   :  { %2988 = vtanh.f32 %v1459_v33 }
0x11c3   :  { %v2989_v34 = vpop.eup %2988 }
0x11c4   :  { %1462 = vrot.lane.b32.xlu1 %v2989_v34, %s3149_s25 }
0x1236   :  { %v1463_v35 = vpop.permute.xlu1 %1462 }
0x1237   :  { %v1465_v36 = vmul.f32 %v1463_v35, %v1443_v6 }
0x1239   :  { %1475 = vrot.lane.b32.xlu1 %v1465_v36, %s3149_s25  ;;  %1472 = vrot.lane.b32.xlu0 %v1465_v36, %s3150_s27 }
0x123d   :  { %1467 = vrot.lane.b32.xlu0 %v1459_v33, %s3151_s15 }
0x12ab   :  { %v1476_v37 = vpop.permute.xlu1 %1475  ;;  %v1473_v39 = vpop.permute.xlu0 %1472 }
0x12ac   :  { %v1479_v41 = vsel %vm1478_vm10, %v1473_v39, %v1476_v37  ;;  %v1485_v42 = vmul.f32 %v1473_v39, %v3414_v40 }
0x12ad   :  { %v1480_v44 = vmul.f32 %v1479_v41, %v3383_v30 }
0x12ae   :  { %v1486_v45 = vmul.f32 %v1485_v42, %v1484_v38 }
0x12af   :  { %1481 = vst.msk [vmem:[#allocation2] sm:$0xf] %vm237_vm8, %v1480_v44  ;;  %v1468_v46 = vpop.permute.xlu0 %1467 }
0x12b0   :  { %v1487_v47 = vmax.f32 %v1482_v43, %v1486_v45  ;;  %1470 = vst.msk [vmem:[#allocation3] sm:$0xf] %vm240_vm0, %v1468_v46 }
0x12b2   :  { %1488 = vst.msk [vmem:[#allocation4] sm:$0xf] %vm240_vm0, %v1487_v47 }
0x12b3 PF:  { %s3818_s7 = sld [smem:[#allocation19_spill]] }
0x12b9   :  { %p2287_p3 = scmp.le.s32.totalorder %s3818_s7, 6 }
0x12ba   :  { %s3154_s30 = smov (!%p2287_p3), 64   ;;  %s3155_s4 = smov (!%p2287_p3), 32  }
0x12bb   :  { %1492 = sbr.rel (%p2287_p3) target bundleno = 5540 (0x15a4), region = 109  ;;  %s3156_s8 = smov (!%p2287_p3), 96  }
0x12c0   :  { %v3152_v48 = vmov 0.0   ;;  %v1495_v49 = vld [vmem:[#allocation2] sm:$0xf]  ;;  %v1494_v50 = vld [vmem:[#allocation8 + $0x18] sm:$0xf]  ;;  %vm3153_vm12 = vmmov 0  }
0x12c1   :  { %2740 = vmatprep.subr.mxu0 %v3152_v48  ;;  %2759 = vmatprep.subr.mxu1 %v3152_v48  ;;  %v1652_v0 = vld [vmem:[#allocation3] sm:$0xf]  ;;  %vm1686_vm13 = vcmask 261120   ;;  %v1690_v36 = vld [vmem:[#allocation4] sm:$0xf] }
0x12c2   :  { %2741 = vmatpush3.msra.mxu0 %v3362_v25  ;;  %2760 = vmatpush3.msra.mxu1 %v3322_v17  ;;  %v1692_v32 = vld [vmem:[#allocation10 + $0x18] sm:$0xf] }
0x12c3   :  { %2742 = vmatprep.subr.mxu0 %v3152_v48  ;;  %2761 = vmatprep.subr.mxu1 %v3152_v48 }
0x12c4   :  { %2743 = vmatpush3.msra.mxu0 %v3357_v24  ;;  %2762 = vmatpush3.msra.mxu1 %v3317_v16 }
0x12c5   :  { %2744 = vmatprep.subr.mxu0 %v3152_v48  ;;  %2763 = vmatprep.subr.mxu1 %v3152_v48 }
0x12c6   :  { %2745 = vmatpush3.msra.mxu0 %v3352_v23  ;;  %2764 = vmatpush3.msra.mxu1 %v3312_v15 }
0x12c7   :  { %2746 = vmatprep.subr.mxu0 %v3152_v48  ;;  %2765 = vmatprep.subr.mxu1 %v3152_v48 }
0x12c8   :  { %2747 = vmatpush3.msra.mxu0 %v3347_v22  ;;  %2766 = vmatpush3.msra.mxu1 %v3307_v14 }
0x12c9   :  { %2748 = vmatprep.subr.mxu0 %v3152_v48  ;;  %2767 = vmatprep.subr.mxu1 %v3152_v48 }
0x12ca   :  { %2749 = vmatpush3.msra.mxu0 %v3342_v21  ;;  %2768 = vmatpush3.msra.mxu1 %v3302_v13 }
0x12cb   :  { %2750 = vmatprep.subr.mxu0 %v3152_v48  ;;  %2769 = vmatprep.subr.mxu1 %v3152_v48 }
0x12cc   :  { %2751 = vmatpush3.msra.mxu0 %v3337_v20  ;;  %2770 = vmatpush3.msra.mxu1 %v3297_v12 }
0x12cd   :  { %2752 = vmatprep.subr.mxu0 %v3152_v48  ;;  %2771 = vmatprep.subr.mxu1 %v3152_v48 }
0x12ce   :  { %2753 = vmatpush3.msra.mxu0 %v3332_v19  ;;  %2772 = vmatpush3.msra.mxu1 %v3292_v11 }
0x12cf   :  { %2754 = vmatprep.subr.mxu0 %v3152_v48  ;;  %2773 = vmatprep.subr.mxu1 %v3152_v48 }
0x12d0   :  { %2755 = vmatpush3.msra.mxu0 %v3327_v18  ;;  %2756 = vmatprep.mubr.msk.f32.mxu0 %vm3153_vm12, %v3152_v48 }
0x12d1   :  { %2774 = vmatpush3.msra.mxu1 %v3287_v10  ;;  %2775 = vmatprep.mubr.msk.f32.mxu1 %vm3153_vm12, %v3152_v48 }
0x12d2   :  { %2757 = vmatmul.mubr.msk.f32.vlgmr.msra.gmra.mxu0 %vm161_vm11, %v1495_v49  ;;  %2776 = vmatmul.mubr.msk.f32.vlgmr.msra.gmra.mxu1 %vm161_vm11, %v1494_v50 }
0x1392   :  { %v1565_v51 = vpop.f32.mrf.mxu0  ;;  %v1638_v52 = vpop.f32.mrf.mxu1 }
0x1393   :  { %v1639_v53 = vadd.f32 %v1638_v52, %v1565_v51 }
0x1394   :  { %v2758_v54 = vpop.f32.mrf.mxu0  ;;  %v2777_v55 = vpop.f32.mrf.mxu1 }
0x1395   :  { %v1642_v56 = vadd.f32 %v1639_v53, %v3367_v26 }
0x1397   :  { %v1643_v57 = vmul.f32 %v1642_v56, %v3275_v7 }
0x1399   :  { %v2290_v58 = vmul.f32 -1.442695, %v1643_v57 }
0x139b   :  { %2990 = vpow2.f32 %v2290_v58 }
0x13a8   :  { %v2991_v59 = vpop.eup %2990 }
0x13a9   :  { %v1647_v60 = vadd.f32 1.0, %v2991_v59 }
0x13ab   :  { %2992 = vrcp.f32 %v1647_v60 }
0x13b8   :  { %v2993_v61 = vpop.eup %2992 }
0x13b9   :  { %v1650_v62 = vmul.f32 %v2993_v61, %v3275_v7 }
0x13bb   :  { %v1651_v63 = vadd.f32 %v1650_v62, %v3278_v8 }
0x13bd   :  { %1659 = vrot.lane.b32.xlu0 %v1651_v63, %s3154_s30 }
0x13c1   :  { %1654 = vrot.lane.b32.xlu0 %v1652_v0, %s3155_s4 }
0x142f   :  { %v1660_v1 = vpop.permute.xlu0 %1659 }
0x1430   :  { %v1662_v2 = vmul.f32 %v1660_v1, %v1651_v63 }
0x1432   :  { %1664 = vrot.lane.b32.xlu1 %v1662_v2, %s3155_s4 }
0x1433   :  { %v1655_v3 = vpop.permute.xlu0 %1654 }
0x1434   :  { %v1657_v4 = vmul.f32 %v1655_v3, %v1651_v63 }
0x14a4   :  { %v1665_v6 = vpop.permute.xlu1 %1664 }
0x14a5   :  { %v1667_v9 = vadd.f32 %v1665_v6, %v1657_v4 }
0x14a7   :  { %2994 = vtanh.f32 %v1667_v9 }
0x14b4   :  { %v2995_v27 = vpop.eup %2994 }
0x14b5   :  { %1670 = vrot.lane.b32.xlu1 %v2995_v27, %s3154_s30 }
0x1527   :  { %v1671_v28 = vpop.permute.xlu1 %1670 }
0x1528   :  { %v1673_v29 = vmul.f32 %v1671_v28, %v1651_v63 }
0x152a   :  { %1683 = vrot.lane.b32.xlu1 %v1673_v29, %s3154_s30  ;;  %1680 = vrot.lane.b32.xlu0 %v1673_v29, %s3155_s4 }
0x152e   :  { %1675 = vrot.lane.b32.xlu0 %v1667_v9, %s3156_s8 }
0x159c   :  { %v1684_v31 = vpop.permute.xlu1 %1683  ;;  %v1681_v33 = vpop.permute.xlu0 %1680 }
0x159d   :  { %v1687_v34 = vsel %vm1686_vm13, %v1681_v33, %v1684_v31  ;;  %v1693_v35 = vmul.f32 %v1681_v33, %v3414_v40 }
0x159e   :  { %v1688_v37 = vmul.f32 %v1687_v34, %v3383_v30 }
0x159f   :  { %v1694_v38 = vmul.f32 %v1693_v35, %v1692_v32 }
0x15a0   :  { %1689 = vst.msk [vmem:[#allocation2] sm:$0xf] %vm237_vm8, %v1688_v37  ;;  %v1676_v39 = vpop.permute.xlu0 %1675 }
0x15a1   :  { %v1695_v41 = vmax.f32 %v1690_v36, %v1694_v38  ;;  %1678 = vst.msk [vmem:[#allocation3] sm:$0xf] %vm240_vm0, %v1676_v39 }
0x15a3   :  { %1696 = vst.msk [vmem:[#allocation4] sm:$0xf] %vm240_vm0, %v1695_v41 }
0x15a4 PF:  { %s3819_s19 = sld [smem:[#allocation19_spill]] }
0x15aa   :  { %p2291_p4 = scmp.le.s32.totalorder %s3819_s19, 7 }
0x15ab   :  { %s3159_s1 = smov (!%p2291_p4), 64   ;;  %s3160_s28 = smov (!%p2291_p4), 32  }
0x15ac   :  { %1700 = sbr.rel (%p2291_p4) target bundleno = 6293 (0x1895), region = 113  ;;  %s3161_s3 = smov (!%p2291_p4), 96  }
0x15b1   :  { %v3157_v42 = vmov 0.0   ;;  %vm3158_vm14 = vmmov 0   ;;  %v1898_v54 = vld [vmem:[#allocation4] sm:$0xf] }
0x15b2   :  { %2778 = vmatprep.subr.mxu0 %v3157_v42  ;;  %2797 = vmatprep.subr.mxu1 %v3157_v42 }
0x15b3   :  { %2779 = vmatpush3.msra.mxu0 %v3362_v25  ;;  %2798 = vmatpush3.msra.mxu1 %v3322_v17  ;;  %v1860_v25 = vld [vmem:[#allocation3] sm:$0xf] }
0x15b4   :  { %2780 = vmatprep.subr.mxu0 %v3157_v42  ;;  %2799 = vmatprep.subr.mxu1 %v3157_v42 }
0x15b5   :  { %2781 = vmatpush3.msra.mxu0 %v3357_v24  ;;  %2800 = vmatpush3.msra.mxu1 %v3317_v16 }
0x15b6   :  { %2782 = vmatprep.subr.mxu0 %v3157_v42  ;;  %2801 = vmatprep.subr.mxu1 %v3157_v42 }
0x15b7   :  { %2783 = vmatpush3.msra.mxu0 %v3352_v23  ;;  %2802 = vmatpush3.msra.mxu1 %v3312_v15  ;;  %v1702_v15 = vld [vmem:[#allocation8 + $0x1c] sm:$0xf] }
0x15b8   :  { %2784 = vmatprep.subr.mxu0 %v3157_v42  ;;  %2803 = vmatprep.subr.mxu1 %v3157_v42 }
0x15b9   :  { %2785 = vmatpush3.msra.mxu0 %v3347_v22  ;;  %2804 = vmatpush3.msra.mxu1 %v3307_v14  ;;  %v1703_v14 = vld [vmem:[#allocation2] sm:$0xf] }
0x15ba   :  { %2786 = vmatprep.subr.mxu0 %v3157_v42  ;;  %2805 = vmatprep.subr.mxu1 %v3157_v42 }
0x15bb   :  { %2787 = vmatpush3.msra.mxu0 %v3342_v21  ;;  %2806 = vmatpush3.msra.mxu1 %v3302_v13 }
0x15bc   :  { %2788 = vmatprep.subr.mxu0 %v3157_v42  ;;  %2807 = vmatprep.subr.mxu1 %v3157_v42 }
0x15bd   :  { %2789 = vmatpush3.msra.mxu0 %v3337_v20  ;;  %2808 = vmatpush3.msra.mxu1 %v3297_v12 }
0x15be   :  { %2790 = vmatprep.subr.mxu0 %v3157_v42  ;;  %2809 = vmatprep.subr.mxu1 %v3157_v42 }
0x15bf   :  { %2791 = vmatpush3.msra.mxu0 %v3332_v19  ;;  %2810 = vmatpush3.msra.mxu1 %v3292_v11 }
0x15c0   :  { %2792 = vmatprep.subr.mxu0 %v3157_v42  ;;  %2811 = vmatprep.subr.mxu1 %v3157_v42 }
0x15c1   :  { %2793 = vmatpush3.msra.mxu0 %v3327_v18  ;;  %2794 = vmatprep.mubr.msk.f32.mxu0 %vm3158_vm14, %v3157_v42 }
0x15c2   :  { %2812 = vmatpush3.msra.mxu1 %v3287_v10  ;;  %2813 = vmatprep.mubr.msk.f32.mxu1 %vm3158_vm14, %v3157_v42 }
0x15c3   :  { %2795 = vmatmul.mubr.msk.f32.vlgmr.msra.gmra.mxu0 %vm161_vm11, %v1703_v14  ;;  %2814 = vmatmul.mubr.msk.f32.vlgmr.msra.gmra.mxu1 %vm161_vm11, %v1702_v15  ;;  %vm1894_vm11 = vcmask 261120  }
0x1683   :  { %v1773_v12 = vpop.f32.mrf.mxu0  ;;  %v1846_v13 = vpop.f32.mrf.mxu1 }
0x1684   :  { %v1847_v16 = vadd.f32 %v1846_v13, %v1773_v12 }
0x1685   :  { %v2796_v17 = vpop.f32.mrf.mxu0  ;;  %v2815_v11 = vpop.f32.mrf.mxu1 }
0x1686   :  { %v1850_v19 = vadd.f32 %v1847_v16, %v3367_v26 }
0x1688   :  { %v1851_v20 = vmul.f32 %v1850_v19, %v3275_v7 }
0x168a   :  { %v2294_v21 = vmul.f32 -1.442695, %v1851_v20 }
0x168c   :  { %2996 = vpow2.f32 %v2294_v21 }
0x1699   :  { %v2997_v18 = vpop.eup %2996 }
0x169a   :  { %v1855_v22 = vadd.f32 1.0, %v2997_v18 }
0x169c   :  { %2998 = vrcp.f32 %v1855_v22 }
0x16a9   :  { %v2999_v10 = vpop.eup %2998 }
0x16aa   :  { %v1858_v23 = vmul.f32 %v2999_v10, %v3275_v7 }
0x16ac   :  { %v1859_v24 = vadd.f32 %v1858_v23, %v3278_v8  ;;  %v1900_v8 = vld [vmem:[#allocation10 + $0x1c] sm:$0xf] }
0x16ae   :  { %1867 = vrot.lane.b32.xlu0 %v1859_v24, %s3159_s1 }
0x16b2   :  { %1862 = vrot.lane.b32.xlu0 %v1860_v25, %s3160_s28 }
0x1720   :  { %v1868_v43 = vpop.permute.xlu0 %1867 }
0x1721   :  { %v1870_v44 = vmul.f32 %v1868_v43, %v1859_v24 }
0x1723   :  { %1872 = vrot.lane.b32.xlu1 %v1870_v44, %s3160_s28 }
0x1724   :  { %v1863_v26 = vpop.permute.xlu0 %1862 }
0x1725   :  { %v1865_v45 = vmul.f32 %v1863_v26, %v1859_v24 }
0x1795   :  { %v1873_v46 = vpop.permute.xlu1 %1872 }
0x1796   :  { %v1875_v47 = vadd.f32 %v1873_v46, %v1865_v45 }
0x1798   :  { %3000 = vtanh.f32 %v1875_v47 }
0x17a5   :  { %v3001_v48 = vpop.eup %3000 }
0x17a6   :  { %1878 = vrot.lane.b32.xlu1 %v3001_v48, %s3159_s1 }
0x1818   :  { %v1879_v49 = vpop.permute.xlu1 %1878 }
0x1819   :  { %v1881_v50 = vmul.f32 %v1879_v49, %v1859_v24 }
0x181b   :  { %1891 = vrot.lane.b32.xlu1 %v1881_v50, %s3159_s1  ;;  %1888 = vrot.lane.b32.xlu0 %v1881_v50, %s3160_s28 }
0x181f   :  { %1883 = vrot.lane.b32.xlu0 %v1875_v47, %s3161_s3 }
0x188d   :  { %v1892_v7 = vpop.permute.xlu1 %1891  ;;  %v1889_v51 = vpop.permute.xlu0 %1888 }
0x188e   :  { %v1895_v52 = vsel %vm1894_vm11, %v1889_v51, %v1892_v7  ;;  %v1901_v53 = vmul.f32 %v1889_v51, %v3414_v40 }
0x188f   :  { %v1896_v55 = vmul.f32 %v1895_v52, %v3383_v30 }
0x1890   :  { %v1902_v56 = vmul.f32 %v1901_v53, %v1900_v8 }
0x1891   :  { %1897 = vst.msk [vmem:[#allocation2] sm:$0xf] %vm237_vm8, %v1896_v55  ;;  %v1884_v57 = vpop.permute.xlu0 %1883 }
0x1892   :  { %v1903_v58 = vmax.f32 %v1898_v54, %v1902_v56  ;;  %1886 = vst.msk [vmem:[#allocation3] sm:$0xf] %vm240_vm0, %v1884_v57 }
0x1894   :  { %1904 = vst.msk [vmem:[#allocation4] sm:$0xf] %vm240_vm0, %v1903_v58 }
0x1895 PF:  { %2816 = vmatprep.subr.mxu1 %v3118_v5  ;;  %v1922_v59 = vld [vmem:[#allocation13 + $0x18] sm:$0xff]  ;;  %v1921_v60 = vld [vmem:[#allocation13 + $0x10] sm:$0xff]  ;;  %2824 = vmatprep.mubr.msk.f32.mxu1 %vm3119_vm1, %v3118_v5  ;;  %v1920_v30 = vld [vmem:[#allocation13 + $0x8] sm:$0xff]  ;;  %vm1923_vm0 = vcmask 261120   ;;  %vm2253_vm15 = vcmask 1024  }
0x1896   :  { %2817 = vmatpush3.msra.mxu1 %v1922_v59  ;;  %2854 = vmatprep.subr.mxu0 %v3118_v5  ;;  %v1919_v40 = vld [vmem:[#allocation13] sm:$0xff]  ;;  %v2074_v61 = vld [vmem:[#allocation15 + $0x18] sm:$0xff]  ;;  %v2073_v63 = vld [vmem:[#allocation15 + $0x10] sm:$0xff] }
0x1897   :  { %2818 = vmatprep.subr.mxu1 %v3118_v5  ;;  %2862 = vmatprep.mubr.msk.f32.mxu0 %vm3119_vm1, %v3118_v5  ;;  %v1918_v0 = vld [vmem:[%s3802_s10 + $0x58] sm:$0xff]  ;;  %v1917_v2 = vld [vmem:[%s3802_s10 + $0x50] sm:$0xff]  ;;  %v1916_v4 = vld [vmem:[%s3802_s10 + $0x48] sm:$0xff] }
0x1898   :  { %2819 = vmatpush3.msra.mxu1 %v1921_v60  ;;  %2855 = vmatpush3.msra.mxu0 %v2074_v61  ;;  %v2072_v1 = vld [vmem:[#allocation15 + $0x8] sm:$0xff]  ;;  %v2071_v6 = vld [vmem:[#allocation15] sm:$0xff]  ;;  %v1915_v9 = vld [vmem:[%s3802_s10 + $0x40] sm:$0xff] }
0x1899   :  { %2820 = vmatprep.subr.mxu1 %v3118_v5  ;;  %2856 = vmatprep.subr.mxu0 %v3118_v5  ;;  %v1914_v27 = vld [vmem:[%s3802_s10 + $0x38] sm:$0xff]  ;;  %v1913_v28 = vld [vmem:[%s3802_s10 + $0x30] sm:$0xff]  ;;  %v1912_v29 = vld [vmem:[%s3802_s10 + $0x28] sm:$0xff] }
0x189a   :  { %2821 = vmatpush3.msra.mxu1 %v1920_v30  ;;  %2857 = vmatpush3.msra.mxu0 %v2073_v63  ;;  %v1911_v31 = vld [vmem:[%s3802_s10 + $0x20] sm:$0xff]  ;;  %v1910_v32 = vld [vmem:[%s3802_s10 + $0x18] sm:$0xff]  ;;  %v1909_v33 = vld [vmem:[%s3802_s10 + $0x10] sm:$0xff] }
0x189b   :  { %v1905_v62 = vld [vmem:[#allocation4] sm:$0xf]  ;;  %2822 = vmatprep.subr.mxu1 %v3118_v5  ;;  %2858 = vmatprep.subr.mxu0 %v3118_v5  ;;  %v1907_v35 = vld [vmem:[%s3802_s10] sm:$0xff]  ;;  %v1906_v36 = vld [vmem:[#allocation12] sm:$0x3] }
0x189c   :  { %2823 = vmatpush3.msra.mxu1 %v1919_v40  ;;  %v2075_v3 = vrot.slane %v1905_v62, 2  ;;  %2859 = vmatpush3.msra.mxu0 %v2072_v1  ;;  %v1908_v34 = vld [vmem:[%s3802_s10 + $0x8] sm:$0xff]  ;;  %v2175_v37 = vld [vmem:[%s3806_s14 + $0x78] sm:$0xff]  ;;  %v2174_v38 = vld [vmem:[%s3806_s14 + $0x70] sm:$0xff] }
0x189d   :  { %2825 = vmatmul.mubr.msk.f32.vlgmr.msra.gmra.mxu1 %vm1923_vm0, %v1905_v62  ;;  %2827 = vmatprep.subr.mxu1 %v3118_v5  ;;  %v2173_v39 = vld [vmem:[%s3806_s14 + $0x68] sm:$0xff]  ;;  %v2172_v41 = vld [vmem:[%s3806_s14 + $0x60] sm:$0xff]  ;;  %v2171_v42 = vld [vmem:[%s3806_s14 + $0x58] sm:$0xff] }
0x189e   :  { %2828 = vmatpush3.msra.mxu1 %v1918_v0  ;;  %2860 = vmatprep.subr.mxu0 %v3118_v5  ;;  %v2170_v14 = vld [vmem:[%s3806_s14 + $0x50] sm:$0xff]  ;;  %v2169_v15 = vld [vmem:[%s3806_s14 + $0x48] sm:$0xff]  ;;  %v2168_v12 = vld [vmem:[%s3806_s14 + $0x40] sm:$0xff] }
0x189f   :  { %2829 = vmatprep.subr.mxu1 %v3118_v5  ;;  %2851 = vmatprep.mubr.msk.f32.mxu1 %vm3119_vm1, %v3118_v5  ;;  %v2167_v13 = vld [vmem:[%s3806_s14 + $0x38] sm:$0xff]  ;;  %v2166_v16 = vld [vmem:[%s3806_s14 + $0x30] sm:$0xff]  ;;  %v2165_v17 = vld [vmem:[%s3806_s14 + $0x28] sm:$0xff] }
0x18a0   :  { %2830 = vmatpush3.msra.mxu1 %v1917_v2  ;;  %2861 = vmatpush3.msra.mxu0 %v2071_v6  ;;  %v2164_v11 = vld [vmem:[%s3806_s14 + $0x20] sm:$0xff]  ;;  %v2163_v19 = vld [vmem:[%s3806_s14 + $0x18] sm:$0xff]  ;;  %v2162_v20 = vld [vmem:[%s3806_s14 + $0x10] sm:$0xff] }
0x18a1   :  { %2831 = vmatprep.subr.mxu1 %v3118_v5  ;;  %2863 = vmatmul.mubr.msk.f32.vlgmr.msra.gmra.mxu0 %vm1923_vm0, %v2075_v3  ;;  %v2161_v21 = vld [vmem:[%s3806_s14 + $0x8] sm:$0xff]  ;;  %v2160_v18 = vld [vmem:[%s3806_s14] sm:$0xff] }
0x18a2   :  { %2832 = vmatpush3.msra.mxu1 %v1916_v4  ;;  %2865 = vmatprep.subr.mxu0 %v3118_v5  ;;  %v2298_v44 = vld [vmem:[%s3805_s13] ss:$0 sm:$0xff]  ;;  %v2299_v49 = vld [vmem:[#allocation7] ss:$0 sm:$0xff] }
0x18a3   :  { %2833 = vmatprep.subr.mxu1 %v3118_v5  ;;  %2897 = vmatprep.mubr.msk.f32.mxu0 %vm3119_vm1, %v3118_v5  ;;  %vm1997_vm1 = vcmask 785408  }
0x18a4   :  { %2834 = vmatpush3.msra.mxu1 %v1915_v9  ;;  %2866 = vmatpush3.msra.mxu0 %v2175_v37 }
0x18a5   :  { %2835 = vmatprep.subr.mxu1 %v3118_v5  ;;  %2867 = vmatprep.subr.mxu0 %v3118_v5 }
0x18a6   :  { %2836 = vmatpush3.msra.mxu1 %v1914_v27  ;;  %2868 = vmatpush3.msra.mxu0 %v2174_v38 }
0x18a7   :  { %2837 = vmatprep.subr.mxu1 %v3118_v5  ;;  %2869 = vmatprep.subr.mxu0 %v3118_v5 }
0x18a8   :  { %2838 = vmatpush3.msra.mxu1 %v1913_v28  ;;  %2870 = vmatpush3.msra.mxu0 %v2173_v39 }
0x18a9   :  { %2839 = vmatprep.subr.mxu1 %v3118_v5  ;;  %2871 = vmatprep.subr.mxu0 %v3118_v5 }
0x18aa   :  { %2840 = vmatpush3.msra.mxu1 %v1912_v29  ;;  %2872 = vmatpush3.msra.mxu0 %v2172_v41 }
0x18ab   :  { %2841 = vmatprep.subr.mxu1 %v3118_v5  ;;  %2873 = vmatprep.subr.mxu0 %v3118_v5 }
0x18ac   :  { %2842 = vmatpush3.msra.mxu1 %v1911_v31  ;;  %2874 = vmatpush3.msra.mxu0 %v2171_v42 }
0x18ad   :  { %2843 = vmatprep.subr.mxu1 %v3118_v5  ;;  %2875 = vmatprep.subr.mxu0 %v3118_v5 }
0x18ae   :  { %2844 = vmatpush3.msra.mxu1 %v1910_v32  ;;  %2876 = vmatpush3.msra.mxu0 %v2170_v14 }
0x18af   :  { %2845 = vmatprep.subr.mxu1 %v3118_v5  ;;  %2877 = vmatprep.subr.mxu0 %v3118_v5 }
0x18b0   :  { %2846 = vmatpush3.msra.mxu1 %v1909_v33  ;;  %2878 = vmatpush3.msra.mxu0 %v2169_v15 }
0x18b1   :  { %2847 = vmatprep.subr.mxu1 %v3118_v5  ;;  %2879 = vmatprep.subr.mxu0 %v3118_v5 }
0x18b2   :  { %2848 = vmatpush3.msra.mxu1 %v1908_v34  ;;  %2880 = vmatpush3.msra.mxu0 %v2168_v12 }
0x18b3   :  { %2849 = vmatprep.subr.mxu1 %v3118_v5  ;;  %2881 = vmatprep.subr.mxu0 %v3118_v5 }
0x18b4   :  { %2850 = vmatpush3.msra.mxu1 %v1907_v35  ;;  %2882 = vmatpush3.msra.mxu0 %v2167_v13 }
0x18b5   :  { %2852 = vmatmul.mubr.msk.f32.vlgmr.msra.gmra.mxu1 %vm1997_vm1, %v1906_v36  ;;  %2883 = vmatprep.subr.mxu0 %v3118_v5 }
0x18b6   :  { %2884 = vmatpush3.msra.mxu0 %v2166_v16 }
0x18b7   :  { %2885 = vmatprep.subr.mxu0 %v3118_v5 }
0x18b8   :  { %2886 = vmatpush3.msra.mxu0 %v2165_v17 }
0x18b9   :  { %2887 = vmatprep.subr.mxu0 %v3118_v5 }
0x18ba   :  { %2888 = vmatpush3.msra.mxu0 %v2164_v11 }
0x18bb   :  { %2889 = vmatprep.subr.mxu0 %v3118_v5 }
0x18bc   :  { %2890 = vmatpush3.msra.mxu0 %v2163_v19 }
0x18bd   :  { %2891 = vmatprep.subr.mxu0 %v3118_v5 }
0x18be   :  { %2892 = vmatpush3.msra.mxu0 %v2162_v20 }
0x18bf   :  { %2893 = vmatprep.subr.mxu0 %v3118_v5 }
0x18c0   :  { %2894 = vmatpush3.msra.mxu0 %v2161_v21 }
0x18c1   :  { %2895 = vmatprep.subr.mxu0 %v3118_v5 }
0x18c2   :  { %2896 = vmatpush3.msra.mxu0 %v2160_v18 }
0x195d   :  { %v1993_v22 = vpop.f32.mrf.mxu1 }
0x195f   :  { %v2826_v10 = vpop.f32.mrf.mxu1 }
0x1961   :  { %v2144_v23 = vpop.f32.mrf.mxu0 }
0x1963   :  { %v2864_v24 = vpop.f32.mrf.mxu0 }
0x1975   :  { %v2067_v25 = vpop.f32.mrf.mxu1 }
0x1976   :  { %v2068_v43 = vadd.f32 %v2067_v25, %v1993_v22 }
0x1977   :  { %v2853_v26 = vpop.f32.mrf.mxu1 }
0x1978   :  { %v2148_v45 = vadd.f32 %v2144_v23, %v2068_v43 }
0x197a   :  { %v2156_v46 = vadd.f32 %v2298_v44, %v2148_v45 }
0x197c   :  { %v2158_v47 = vmul.f32 0.01, %v2156_v46  ;;  %vm2157_vm8 = vcmp.gt.f32.partialorder %v2156_v46, 0.0 }
0x197e   :  { %v2159_v48 = vsel %vm2157_vm8, %v2156_v46, %v2158_v47 }
0x197f   :  { %2898 = vmatmul.mubr.f32.vlgmr.msra.gmra.mxu0 %v2159_v48 }
0x1a3f   :  { %v2249_v5 = vpop.f32.mrf.mxu0 }
0x1a40   :  { %v2250_v50 = vadd.f32 %v2299_v49, %v2249_v5 }
0x1a41   :  { %v2899_v7 = vpop.f32.mrf.mxu0 }
0x1a42   :  { %2254 = vst.msk [vmem:[%s3808_s16] sm:$0x3] %vm2253_vm15, %v2250_v50 }
0x1a43   :  { %2259 = vsyncpa [#allocation9], 1 }
0x1a44   :  { %2260 = vsyncpa [#allocation11], 1 }
0x1a45   :  { %2261 = vsyncpa [#allocation14], 1 }

</bundles_post_ra>
